<compile_context>
chip_gen: v7x
topology: tpu7x:2x2x1
jax: 0.10.0
libtpu: 0.0.40
codegen_flags: <defaults>
</compile_context>

<pallas_src>
import functools

import jax
import jax.numpy as jnp
from jax.experimental import pallas as pl
from jax.experimental.pallas import tpu as pltpu

LANE = 128
SUBLANE = 8


def _round_up(x, m):
    return ((x + m - 1) // m) * m


def _choose_h_tile(H, W, Wp, cin_p, d):
    """Largest divisor of H whose per-strip f32 temporaries stay within a modest
    VMEM budget and whose flattened out tile (TH*W) stays sublane-aligned."""
    budget = 6 * 1024 * 1024  # bytes per (TH+2d, Wp, Cin_p) f32 temporary
    divisors = [t for t in range(1, H + 1) if H % t == 0]
    legal = [t for t in divisors if t == H or (t * W) % SUBLANE == 0]
    fitting = [t for t in legal if (t + 2 * d) * Wp * cin_p * 4 <= budget]
    return max(fitting) if fitting else min(legal)


def _vmem_limit_bytes():
    cap = None
    try:
        cap = getattr(pltpu.get_tpu_info(), "vmem_capacity_bytes", None)
    except Exception:
        cap = None
    if not cap:
        cap = 64 * 1024 * 1024  # conservative default (v7x-sized)
    return int(min(100 * 1024 * 1024, (cap * 3) // 4))


def _sepconv_kernel(xp_ref, wdw_ref, wpw_ref, out_ref, dw_ref, *, d, W, Wp, TH):
    # xp_ref : (1, Hp, Wp, Cp)   bf16 padded input (halo + channel + W-alignment pad)
    # wdw_ref: (3, 3, Cp)        f32 depthwise weights (zero in padded channels)
    # wpw_ref: (Cp, tco)         bf16 pointwise weight tile
    # out_ref: (1, TH*W, tco)    flat, lane-dense output tile
    # dw_ref : (TH*W, Cp)        bf16 depthwise result, carried across the j axis
    h = pl.program_id(1)   # H-tile index ("parallel")
    j = pl.program_id(2)   # output-channel tile index (innermost, "arbitrary")

    # ---- depthwise 3x3 (VPU, f32 accumulation): once per (n, h), reused over j ----
    @pl.when(j == 0)
    def _():
        row0 = h * TH
        # Strip of rows with halo; bf16 load, leading-dim slices below are free.
        x = xp_ref[0, pl.ds(row0, TH + 2 * d), :, :]        # (TH+2d, Wp, Cp) bf16
        wdw = wdw_ref[...]                                  # (3, 3, Cp) f32
        cp = wdw.shape[-1]
        acc = None
        for kw in range(3):
            part = None
            for kh in range(3):
                # bf16 * f32 promotes to f32: accumulate in f32, no explicit upcast pass.
                tap = x[kh * d:kh * d + TH] * wdw[kh, kw].reshape(1, 1, cp)
                part = tap if part is None else part + tap  # first tap: no zero init
            if kw:
                # Shift kw*d columns left via XLU roll; halo >= shift so the
                # wrapped tail never lands inside the [0:W] read window.
                part = pltpu.roll(part, shift=Wp - kw * d, axis=1)
            acc = part if acc is None else acc + part
        dw_ref[...] = acc[:, :W, :].astype(jnp.bfloat16).reshape(TH * W, cp)

    # ---- pointwise 1x1 (MXU): bf16 x bf16 -> f32, flat lane-dense store ----
    out_ref[0] = jnp.dot(
        dw_ref[...], wpw_ref[...], preferred_element_type=jnp.float32
    ).astype(out_ref.dtype)


@functools.partial(jax.jit, static_argnames=("dilation", "out_dtype"))
def separable_conv2d_same(x_nchw, dw_weight, pw_weight, *, dilation=1,
                          out_dtype=jnp.float32):
    """Forward pass of SeparableConv2d_same (kernel_size=3, stride=1, bias=False).

    x_nchw:    (N, Cin, H, W) float32
    dw_weight: (Cin, 1, 3, 3) float32    depthwise weight (PyTorch layout, groups=Cin)
    pw_weight: (Cout, Cin, 1, 1) float32 pointwise weight (PyTorch layout)
    returns    (N, Cout, H, W) in out_dtype (default float32)
    """
    N, Cin, H, W = x_nchw.shape
    Cout = pw_weight.shape[0]
    d = int(dilation)
    k = 3
    # fixed_padding: k_eff = k + (k-1)(d-1); pad_total = k_eff - 1 (symmetric for k=3)
    k_eff = k + (k - 1) * (d - 1)
    pad_total = k_eff - 1
    pad_beg = pad_total // 2
    pad_end = pad_total - pad_beg

    Cin_p = _round_up(Cin, LANE)
    Cout_p = _round_up(Cout, LANE)
    Hp = H + pad_beg + pad_end
    Wp_needed = W + pad_beg + pad_end
    Wp = _round_up(Wp_needed, SUBLANE)       # sublane-aligned padded width
    extra_w = Wp - Wp_needed

    # NCHW -> NHWC, halo + channel + W-alignment pad, bf16 cast (fused under jit).
    x_nhwc = jnp.transpose(x_nchw, (0, 2, 3, 1))
    xp = jnp.pad(
        x_nhwc,
        ((0, 0), (pad_beg, pad_end), (pad_beg, pad_end + extra_w), (0, Cin_p - Cin)),
    ).astype(jnp.bfloat16)

    # Depthwise weight (Cin,1,3,3) -> (3,3,Cin_p), f32 so tap math accumulates in f32.
    wdw = jnp.transpose(dw_weight[:, 0, :, :], (1, 2, 0))
    wdw = jnp.pad(wdw, ((0, 0), (0, 0), (0, Cin_p - Cin))).astype(jnp.float32)

    # Pointwise weight (Cout,Cin,1,1) -> (Cin_p, Cout_p), bf16 for the MXU.
    wpw = jnp.transpose(pw_weight[:, :, 0, 0], (1, 0))
    wpw = jnp.pad(wpw, ((0, Cin_p - Cin), (0, Cout_p - Cout))).astype(jnp.bfloat16)

    TH = _choose_h_tile(H, W, Wp, Cin_p, d)
    n_h = H // TH
    tco = 256 if Cout_p % 256 == 0 else 128
    tco = min(tco, Cout_p)
    n_j = Cout_p // tco

    kernel = functools.partial(_sepconv_kernel, d=d, W=W, Wp=Wp, TH=TH)

    out_p = pl.pallas_call(
        kernel,
        out_shape=jax.ShapeDtypeStruct((N, H * W, Cout_p), out_dtype),
        grid_spec=pltpu.PrefetchScalarGridSpec(
            num_scalar_prefetch=0,
            grid=(N, n_h, n_j),
            in_specs=[
                # Same block index across (h, j): resident, fetched once per image.
                pl.BlockSpec((1, Hp, Wp, Cin_p), lambda n, h, j: (n, 0, 0, 0)),
                pl.BlockSpec((3, 3, Cin_p), lambda n, h, j: (0, 0, 0)),
                pl.BlockSpec((Cin_p, tco), lambda n, h, j: (0, j)),
            ],
            out_specs=pl.BlockSpec((1, TH * W, tco), lambda n, h, j: (n, h, j)),
            scratch_shapes=[pltpu.VMEM((TH * W, Cin_p), jnp.bfloat16)],
        ),
        compiler_params=pltpu.CompilerParams(
            # j must stay "arbitrary": dw_ref is carried across it.
            dimension_semantics=("parallel", "parallel", "arbitrary"),
            vmem_limit_bytes=_vmem_limit_bytes(),
        ),
    )(xp, wdw, wpw)

    out = out_p[:, :, :Cout].reshape(N, H, W, Cout)   # drop channel pad, unflatten
    return jnp.transpose(out, (0, 3, 1, 2))           # back to NCHW


# ------------------------------ JAX reference -------------------------------
def separable_conv2d_same_reference(x, dw_weight, pw_weight, *, dilation=1):
    k = dw_weight.shape[-1]
    k_eff = k + (k - 1) * (dilation - 1)
    pad_total = k_eff - 1
    pb, pe = pad_total // 2, pad_total - pad_total // 2
    Cin = x.shape[1]
    o = jax.lax.conv_general_dilated(
        x, dw_weight, window_strides=(1, 1),
        padding=[(pb, pe), (pb, pe)],
        rhs_dilation=(dilation, dilation),
        dimension_numbers=('NCHW', 'OIHW', 'NCHW'),
        feature_group_count=Cin)
    o = jax.lax.conv_general_dilated(
        o, pw_weight, window_strides=(1, 1), padding='VALID',
        dimension_numbers=('NCHW', 'OIHW', 'NCHW'))
    return o


if __name__ == "__main__":
    # Small shapes consistent with the module defaults.
    N, H, W = 2, 16, 16
    inplanes, planes = 4, 4
    dilation = 1

    key = jax.random.PRNGKey(0)
    kx, k1, k2 = jax.random.split(key, 3)
    x = jax.random.normal(kx, (N, inplanes, H, W), jnp.float32)
    dw_w = 0.1 * jax.random.normal(k1, (inplanes, 1, 3, 3), jnp.float32)
    pw_w = 0.1 * jax.random.normal(k2, (planes, inplanes, 1, 1), jnp.float32)

    out = separable_conv2d_same(x, dw_w, pw_w, dilation=dilation)
    out = jax.block_until_ready(out)

    ref = jax.block_until_ready(
        separable_conv2d_same_reference(x, dw_w, pw_w, dilation=dilation))
    assert out.shape == (N, planes, H, W)
    err = float(jnp.max(jnp.abs(out - ref)))
    # Activations and pointwise operands are bf16 (f32 accumulation everywhere),
    # so the error budget vs. the f32 reference is a few 1e-3 at most.
    assert err < 2e-2, f"mismatch vs JAX reference: {err}"

    print("KERNEL_OK")
</pallas_src>

<mosaic_0001>
module attributes {stable_mosaic.version = 11 : i64} {
  func.func @_sepconv_kernel(%arg0: i32, %arg1: i32, %arg2: i32, %arg3: memref<1x18x24x128xbf16, #tpu.memory_space<vmem>>, %arg4: memref<3x3x128xf32, #tpu.memory_space<vmem>>, %arg5: memref<128x128xbf16, #tpu.memory_space<vmem>>, %arg6: memref<1x256x128xf32, #tpu.memory_space<vmem>>, %arg7: memref<256x128xbf16, #tpu.memory_space<vmem>>) attributes {dimension_semantics = [#tpu.dimension_semantics<parallel>, #tpu.dimension_semantics<parallel>, #tpu.dimension_semantics<arbitrary>], iteration_bounds = array<i64: 2, 1, 1>, scalar_prefetch = 0 : i64, scratch_operands = 1 : i64, tpu.core_type = #tpu.core_type<tc>, window_params = [{transform_indices = @transform_0, window_bounds = array<i64: 1, 18, 24, 128>}, {pipeline_mode = #tpu.pipeline_mode<synchronous>, transform_indices = @transform_1, window_bounds = array<i64: 3, 3, 128>}, {transform_indices = @transform_2, window_bounds = array<i64: 128, 128>}, {transform_indices = @transform_3, window_bounds = array<i64: 1, 256, 128>}]} {
    %c0_i32 = arith.constant 0 : i32
    %0 = arith.cmpi eq, %arg2, %c0_i32 : i32
    %1 = arith.extui %0 : i1 to i32
    %c0_i32_0 = arith.constant 0 : i32
    %2 = arith.cmpi ne, %1, %c0_i32_0 : i32
    scf.if %2 {
      %c16_i32 = arith.constant 16 : i32
      %9 = arith.muli %arg1, %c16_i32 : i32
      %c0_7 = arith.constant 0 : index
      %10 = arith.index_cast %9 : i32 to index
      %c0_8 = arith.constant 0 : index
      %c0_9 = arith.constant 0 : index
      %11 = vector.load %arg3[%c0_7, %10, %c0_8, %c0_9] : memref<1x18x24x128xbf16, #tpu.memory_space<vmem>>, vector<1x18x24x128xbf16>
      %12 = vector.shape_cast %11 : vector<1x18x24x128xbf16> to vector<18x24x128xbf16>
      %c0_10 = arith.constant 0 : index
      %c0_11 = arith.constant 0 : index
      %c0_12 = arith.constant 0 : index
      %13 = vector.load %arg4[%c0_10, %c0_11, %c0_12] : memref<3x3x128xf32, #tpu.memory_space<vmem>>, vector<3x3x128xf32>
      %14 = vector.extract_strided_slice %12 {offsets = [0, 0, 0], sizes = [16, 24, 128], strides = [1, 1, 1]} : vector<18x24x128xbf16> to vector<16x24x128xbf16>
      %15 = vector.extract_strided_slice %13 {offsets = [0, 0, 0], sizes = [1, 1, 128], strides = [1, 1, 1]} : vector<3x3x128xf32> to vector<1x1x128xf32>
      %16 = vector.shape_cast %15 : vector<1x1x128xf32> to vector<128xf32>
      %17 = vector.shape_cast %16 : vector<128xf32> to vector<1x1x128xf32>
      %18 = arith.extf %14 : vector<16x24x128xbf16> to vector<16x24x128xf32>
      %19 = vector.broadcast %17 : vector<1x1x128xf32> to vector<16x24x128xf32>
      %20 = arith.mulf %18, %19 : vector<16x24x128xf32>
      %21 = vector.extract_strided_slice %12 {offsets = [1, 0, 0], sizes = [16, 24, 128], strides = [1, 1, 1]} : vector<18x24x128xbf16> to vector<16x24x128xbf16>
      %22 = vector.extract_strided_slice %13 {offsets = [1, 0, 0], sizes = [1, 1, 128], strides = [1, 1, 1]} : vector<3x3x128xf32> to vector<1x1x128xf32>
      %23 = vector.shape_cast %22 : vector<1x1x128xf32> to vector<128xf32>
      %24 = vector.shape_cast %23 : vector<128xf32> to vector<1x1x128xf32>
      %25 = arith.extf %21 : vector<16x24x128xbf16> to vector<16x24x128xf32>
      %26 = vector.broadcast %24 : vector<1x1x128xf32> to vector<16x24x128xf32>
      %27 = arith.mulf %25, %26 : vector<16x24x128xf32>
      %28 = arith.addf %20, %27 : vector<16x24x128xf32>
      %29 = vector.extract_strided_slice %12 {offsets = [2, 0, 0], sizes = [16, 24, 128], strides = [1, 1, 1]} : vector<18x24x128xbf16> to vector<16x24x128xbf16>
      %30 = vector.extract_strided_slice %13 {offsets = [2, 0, 0], sizes = [1, 1, 128], strides = [1, 1, 1]} : vector<3x3x128xf32> to vector<1x1x128xf32>
      %31 = vector.shape_cast %30 : vector<1x1x128xf32> to vector<128xf32>
      %32 = vector.shape_cast %31 : vector<128xf32> to vector<1x1x128xf32>
      %33 = arith.extf %29 : vector<16x24x128xbf16> to vector<16x24x128xf32>
      %34 = vector.broadcast %32 : vector<1x1x128xf32> to vector<16x24x128xf32>
      %35 = arith.mulf %33, %34 : vector<16x24x128xf32>
      %36 = arith.addf %28, %35 : vector<16x24x128xf32>
      %37 = vector.extract_strided_slice %12 {offsets = [0, 0, 0], sizes = [16, 24, 128], strides = [1, 1, 1]} : vector<18x24x128xbf16> to vector<16x24x128xbf16>
      %38 = vector.extract_strided_slice %13 {offsets = [0, 1, 0], sizes = [1, 1, 128], strides = [1, 1, 1]} : vector<3x3x128xf32> to vector<1x1x128xf32>
      %39 = vector.shape_cast %38 : vector<1x1x128xf32> to vector<128xf32>
      %40 = vector.shape_cast %39 : vector<128xf32> to vector<1x1x128xf32>
      %41 = arith.extf %37 : vector<16x24x128xbf16> to vector<16x24x128xf32>
      %42 = vector.broadcast %40 : vector<1x1x128xf32> to vector<16x24x128xf32>
      %43 = arith.mulf %41, %42 : vector<16x24x128xf32>
      %44 = vector.extract_strided_slice %12 {offsets = [1, 0, 0], sizes = [16, 24, 128], strides = [1, 1, 1]} : vector<18x24x128xbf16> to vector<16x24x128xbf16>
      %45 = vector.extract_strided_slice %13 {offsets = [1, 1, 0], sizes = [1, 1, 128], strides = [1, 1, 1]} : vector<3x3x128xf32> to vector<1x1x128xf32>
      %46 = vector.shape_cast %45 : vector<1x1x128xf32> to vector<128xf32>
      %47 = vector.shape_cast %46 : vector<128xf32> to vector<1x1x128xf32>
      %48 = arith.extf %44 : vector<16x24x128xbf16> to vector<16x24x128xf32>
      %49 = vector.broadcast %47 : vector<1x1x128xf32> to vector<16x24x128xf32>
      %50 = arith.mulf %48, %49 : vector<16x24x128xf32>
      %51 = arith.addf %43, %50 : vector<16x24x128xf32>
      %52 = vector.extract_strided_slice %12 {offsets = [2, 0, 0], sizes = [16, 24, 128], strides = [1, 1, 1]} : vector<18x24x128xbf16> to vector<16x24x128xbf16>
      %53 = vector.extract_strided_slice %13 {offsets = [2, 1, 0], sizes = [1, 1, 128], strides = [1, 1, 1]} : vector<3x3x128xf32> to vector<1x1x128xf32>
      %54 = vector.shape_cast %53 : vector<1x1x128xf32> to vector<128xf32>
      %55 = vector.shape_cast %54 : vector<128xf32> to vector<1x1x128xf32>
      %56 = arith.extf %52 : vector<16x24x128xbf16> to vector<16x24x128xf32>
      %57 = vector.broadcast %55 : vector<1x1x128xf32> to vector<16x24x128xf32>
      %58 = arith.mulf %56, %57 : vector<16x24x128xf32>
      %59 = arith.addf %51, %58 : vector<16x24x128xf32>
      %c23_i32 = arith.constant 23 : i32
      %60 = tpu.dynamic_rotate %59 by %c23_i32 dim 1 : vector<16x24x128xf32>, i32 -> vector<16x24x128xf32>
      %61 = arith.addf %36, %60 : vector<16x24x128xf32>
      %62 = vector.extract_strided_slice %12 {offsets = [0, 0, 0], sizes = [16, 24, 128], strides = [1, 1, 1]} : vector<18x24x128xbf16> to vector<16x24x128xbf16>
      %63 = vector.extract_strided_slice %13 {offsets = [0, 2, 0], sizes = [1, 1, 128], strides = [1, 1, 1]} : vector<3x3x128xf32> to vector<1x1x128xf32>
      %64 = vector.shape_cast %63 : vector<1x1x128xf32> to vector<128xf32>
      %65 = vector.shape_cast %64 : vector<128xf32> to vector<1x1x128xf32>
      %66 = arith.extf %62 : vector<16x24x128xbf16> to vector<16x24x128xf32>
      %67 = vector.broadcast %65 : vector<1x1x128xf32> to vector<16x24x128xf32>
      %68 = arith.mulf %66, %67 : vector<16x24x128xf32>
      %69 = vector.extract_strided_slice %12 {offsets = [1, 0, 0], sizes = [16, 24, 128], strides = [1, 1, 1]} : vector<18x24x128xbf16> to vector<16x24x128xbf16>
      %70 = vector.extract_strided_slice %13 {offsets = [1, 2, 0], sizes = [1, 1, 128], strides = [1, 1, 1]} : vector<3x3x128xf32> to vector<1x1x128xf32>
      %71 = vector.shape_cast %70 : vector<1x1x128xf32> to vector<128xf32>
      %72 = vector.shape_cast %71 : vector<128xf32> to vector<1x1x128xf32>
      %73 = arith.extf %69 : vector<16x24x128xbf16> to vector<16x24x128xf32>
      %74 = vector.broadcast %72 : vector<1x1x128xf32> to vector<16x24x128xf32>
      %75 = arith.mulf %73, %74 : vector<16x24x128xf32>
      %76 = arith.addf %68, %75 : vector<16x24x128xf32>
      %77 = vector.extract_strided_slice %12 {offsets = [2, 0, 0], sizes = [16, 24, 128], strides = [1, 1, 1]} : vector<18x24x128xbf16> to vector<16x24x128xbf16>
      %78 = vector.extract_strided_slice %13 {offsets = [2, 2, 0], sizes = [1, 1, 128], strides = [1, 1, 1]} : vector<3x3x128xf32> to vector<1x1x128xf32>
      %79 = vector.shape_cast %78 : vector<1x1x128xf32> to vector<128xf32>
      %80 = vector.shape_cast %79 : vector<128xf32> to vector<1x1x128xf32>
      %81 = arith.extf %77 : vector<16x24x128xbf16> to vector<16x24x128xf32>
      %82 = vector.broadcast %80 : vector<1x1x128xf32> to vector<16x24x128xf32>
      %83 = arith.mulf %81, %82 : vector<16x24x128xf32>
      %84 = arith.addf %76, %83 : vector<16x24x128xf32>
      %c22_i32 = arith.constant 22 : i32
      %85 = tpu.dynamic_rotate %84 by %c22_i32 dim 1 : vector<16x24x128xf32>, i32 -> vector<16x24x128xf32>
      %86 = arith.addf %61, %85 : vector<16x24x128xf32>
      %87 = vector.extract_strided_slice %86 {offsets = [0, 0, 0], sizes = [16, 16, 128], strides = [1, 1, 1]} : vector<16x24x128xf32> to vector<16x16x128xf32>
      %88 = arith.truncf %87 : vector<16x16x128xf32> to vector<16x16x128xbf16>
      %89 = vector.shape_cast %88 : vector<16x16x128xbf16> to vector<256x128xbf16>
      %c0_13 = arith.constant 0 : index
      %c0_14 = arith.constant 0 : index
      %90 = vector.load %arg7[%c0_13, %c0_14] : memref<256x128xbf16, #tpu.memory_space<vmem>>, vector<256x128xbf16>
      tpu.vector_store %arg7[%c0_13, %c0_14], %89 {strides = array<i32>} : memref<256x128xbf16, #tpu.memory_space<vmem>>, vector<256x128xbf16>,
    } else {
    }
    %c0 = arith.constant 0 : index
    %c0_1 = arith.constant 0 : index
    %3 = vector.load %arg7[%c0, %c0_1] : memref<256x128xbf16, #tpu.memory_space<vmem>>, vector<256x128xbf16>
    %c0_2 = arith.constant 0 : index
    %c0_3 = arith.constant 0 : index
    %4 = vector.load %arg5[%c0_2, %c0_3] : memref<128x128xbf16, #tpu.memory_space<vmem>>, vector<128x128xbf16>
    %cst = arith.constant dense<0.000000e+00> : vector<256x128xf32>
    %5 = tpu.matmul %3, %4, %cst {dimension_numbers = #tpu.dot_dimension_numbers<[1], [0], [0], [1], [0, 0, 1, 1], [], []>} : vector<256x128xbf16>, vector<128x128xbf16>, vector<256x128xf32> -> vector<256x128xf32>
    %c0_4 = arith.constant 0 : index
    %c0_5 = arith.constant 0 : index
    %c0_6 = arith.constant 0 : index
    %6 = vector.load %arg6[%c0_4, %c0_5, %c0_6] : memref<1x256x128xf32, #tpu.memory_space<vmem>>, vector<1x256x128xf32>
    %7 = vector.shape_cast %6 : vector<1x256x128xf32> to vector<256x128xf32>
    %8 = vector.shape_cast %5 : vector<256x128xf32> to vector<1x256x128xf32>
    tpu.vector_store %arg6[%c0_4, %c0_5, %c0_6], %8 {strides = array<i32>} : memref<1x256x128xf32, #tpu.memory_space<vmem>>, vector<1x256x128xf32>,
    return
  }
  func.func @transform_0(%arg0: i32, %arg1: i32, %arg2: i32) -> (i32, i32, i32, i32) {
    %c0_i32 = arith.constant 0 : i32
    %c0_i32_0 = arith.constant 0 : i32
    %c0_i32_1 = arith.constant 0 : i32
    %c0_i32_2 = arith.constant 0 : i32
    return %arg0, %c0_i32, %c0_i32_0, %c0_i32_1 : i32, i32, i32, i32
  }
  func.func @transform_1(%arg0: i32, %arg1: i32, %arg2: i32) -> (i32, i32, i32) {
    %c0_i32 = arith.constant 0 : i32
    %c0_i32_0 = arith.constant 0 : i32
    %c0_i32_1 = arith.constant 0 : i32
    %c0_i32_2 = arith.constant 0 : i32
    return %c0_i32, %c0_i32_0, %c0_i32_1 : i32, i32, i32
  }
  func.func @transform_2(%arg0: i32, %arg1: i32, %arg2: i32) -> (i32, i32) {
    %c0_i32 = arith.constant 0 : i32
    %c0_i32_0 = arith.constant 0 : i32
    return %c0_i32, %arg2 : i32, i32
  }
  func.func @transform_3(%arg0: i32, %arg1: i32, %arg2: i32) -> (i32, i32, i32) {
    %c0_i32 = arith.constant 0 : i32
    return %arg0, %arg1, %arg2 : i32, i32, i32
  }
}

</mosaic_0001>

<bundles_post_ra>
// kernel: separable_conv2d_same.1
= control target key start
LH: loop header
LB: loop body
LE: loop exit
PB: predicated region body
PF: predicated region fallthrough
CT: control target
= control target key end

     0   :  { %s1985_s12 = smov 0   ;;  %s1987_s13 = smov 0   ;;  %s3155_s0 = inlined_call_operand.vmem [shape: bf16[2,18,24,128], index: 0, kind: input, shape index: {}]   ;;  %s3156_s1 = inlined_call_operand.vmem [shape: f32[3,3,128], index: 1, kind: input, shape index: {}]   ;;  %s3157_s2 = inlined_call_operand.vmem [shape: bf16[128,128], index: 2, kind: input, shape index: {}]   ;;  %s3158_s3 = inlined_call_operand.vmem [shape: f32[2,256,128], index: 3, kind: output, shape index: {}]  }
   0x1   :  { %s1989_s14 = smov 0  }
   0x2 LB: > { %s32_s15 = sadd.s32 1, %s1959_s13  ;;  %p1671_p0 = scmp.ge.s32.totalorder %s1963_s14, 1  ;;  %s1963_s14 = sphi %s1989_s14, %s13_s14   ;;  %s1959_s13 = sphi %s1987_s13, %s3160_s13   ;;  %s1955_s12 = sphi %s1985_s12, %s3159_s12  }
   0x3   : > { %p34_p1 = scmp.ge.s32.totalorder %s32_s15, 2  ;;  %p169_p2 = scmp.lt.s32.totalorder %s1963_s14, 3 }
   0x5   : > { %s3162_s15 = smov (%p34_p1, %s32_s15), 0  ;;  %p170_p3 = pnand %p1671_p0, %p169_p2 }
   0x6   : > { %v1933_v0 = vld [vmem:[%s3157_s2] sm:$0xff] (!%p170_p3)   ;;  %p204_p4 = scmp.lt.s32.totalorder (!%p170_p3), %s1955_s12, 1  ;;  %v340_v1 = vlaneseq (!%p170_p3)  ;;  %v1934_v2 = vld [vmem:[%s3157_s2 + $0x8] sm:$0xff] (!%p170_p3)   ;;  %v1935_v3 = vld [vmem:[%s3157_s2 + $0x10] sm:$0xff] (!%p170_p3)  }
   0x7   : > { %173 = sbr.rel (%p170_p3) target bundleno = 475 (0x1db), region = 32  ;;  %1844 = vmatprep.subr.bf16.mxu0 (!%p170_p3), %v1933_v0  ;;  %1892 = vmatprep.subr.bf16.mxu1 (!%p170_p3), %v1933_v0  ;;  %v1936_v5 = vld [vmem:[%s3157_s2 + $0x18] sm:$0xff] (!%p170_p3)   ;;  %v289_v18 = vld [vmem:[%s3156_s1] sm:$0x7] (!%p170_p3)  ;;  %v290_v23 = vld [vmem:[%s3156_s1 + $0x4] sm:$0x7] (!%p170_p3) }
   0x8   : > { %1845 = vmatpush3.bf16.msra.mxu0 (!%p170_p3), %v1933_v0  ;;  %1900 = vmatpush3.bf16.msra.mxu1 (!%p170_p3), %v1933_v0  ;;  %v2015_v4 = vshrl.u32 (!%p170_p3), %v340_v1, 7  ;;  %v2067_v27 = vld [vmem:[%s3156_s1 + $0x8] sm:$0x7] (!%p170_p3)  ;;  %v1937_v30 = vld [vmem:[%s3157_s2 + $0x20] sm:$0xff] (!%p170_p3)  }
   0x9   : > { %1846 = vmatprep.subr.bf16.mxu0 (!%p170_p3), %v1934_v2  ;;  %1893 = vmatprep.subr.bf16.mxu1 (!%p170_p3), %v1934_v2  ;;  %v1938_v48 = vld [vmem:[%s3157_s2 + $0x28] sm:$0xff] (!%p170_p3)  }
   0xa   : > { %v342_v6 = vsub.s32 (!%p170_p3), 0, %v2015_v4  ;;  %v520_v10 = vsub.s32 (!%p170_p3), 1, %v2015_v4  ;;  %v2033_v11 = vsub.s32 (!%p170_p3), 2, %v2015_v4  ;;  %vm820_vm0 = vcmp.lt.s32.totalorder (!%p170_p3), %v2015_v4, 7 }
   0xb   : > { %vm1185_vm1 = vcmp.lt.s32.totalorder (!%p170_p3), %v2015_v4, 6 }
   0xc   : > { %1847 = vmatpush3.bf16.msra.mxu0 (!%p170_p3), %v1934_v2  ;;  %1901 = vmatpush3.bf16.msra.mxu1 (!%p170_p3), %v1934_v2  ;;  %v2069_v28 = vrot.slane (!%p170_p3), %v289_v18, %v342_v6  ;;  %v2071_v29 = vrot.slane (!%p170_p3), %v290_v23, %v342_v6  ;;  %v2077_v31 = vrot.slane (!%p170_p3), %v2067_v27, %v342_v6  ;;  %v1939_v2 = vld [vmem:[%s3157_s2 + $0x30] sm:$0xff] (!%p170_p3)  }
   0xd   : > { %1848 = vmatprep.subr.bf16.mxu0 (!%p170_p3), %v1935_v3  ;;  %1894 = vmatprep.subr.bf16.mxu1 (!%p170_p3), %v1935_v3  ;;  %v2079_v32 = vrot.slane (!%p170_p3), %v289_v18, %v520_v10  ;;  %v2081_v33 = vrot.slane (!%p170_p3), %v290_v23, %v520_v10  ;;  %v2120_v55 = vrot.slane (!%p170_p3), %v2067_v27, %v520_v10 }
   0xe   : > { %s3164_s12 = smov (!%p204_p4, %s1955_s12), 1  ;;  %v2123_v56 = vrot.slane %v289_v18, %v2033_v11  ;;  %v2127_v61 = vrot.slane %v290_v23, %v2033_v11 }
   0xf   : > { %s1908_s22 = smul.u32 216, %s3164_s12  ;;  %s1685_s19 = sshll.u32 %s3164_s12, 8 }
  0x10   : > { %1849 = vmatpush3.bf16.msra.mxu0 %v1935_v3  ;;  %1902 = vmatpush3.bf16.msra.mxu1 %v1935_v3 }
  0x11   : > { %s2020_s25 = scalar_lea.vmem %s3155_s0, %s1908_s22  ;;  %1850 = vmatprep.subr.bf16.mxu0 %v1936_v5  ;;  %1895 = vmatprep.subr.bf16.mxu1 %v1936_v5  ;;  %s3112_s22 = scalar_lea.vmem %s3158_s3, %s1685_s19 }
  0x12   : > { %v1687_v7 = vld [vmem:[%s2020_s25] sm:$0xff]   ;;  %v2028_v8 = vld [vmem:[%s2020_s25 + $0x8] sm:$0xff]   ;;  %v1795_v9 = vld [vmem:[%s2020_s25 + $0x10] sm:$0xff]  }
  0x13   : > { %v2035_v12 = vunpack.c.l.bf16 %v1687_v7  ;;  %v2037_v13 = vunpack.c.h.bf16 %v1687_v7  ;;  %v1692_v14 = vunpack.c.l.bf16 %v2028_v8  ;;  %v2041_v15 = vunpack.c.h.bf16 %v2028_v8  ;;  %v1796_v16 = vld [vmem:[%s2020_s25 + $0x18] sm:$0xff]   ;;  %v1797_v17 = vld [vmem:[%s2020_s25 + $0x20] sm:$0xff]   ;;  %v1806_v39 = vld [vmem:[%s2020_s25 + $0x68] sm:$0xff]  }
  0x14   : > { %v2048_v19 = vunpack.c.l.bf16 %v1795_v9  ;;  %v2050_v20 = vunpack.c.h.bf16 %v1795_v9  ;;  %v2052_v21 = vunpack.c.l.bf16 %v1796_v16  ;;  %v2054_v22 = vunpack.c.h.bf16 %v1796_v16  ;;  %v1805_v24 = vld [vmem:[%s2020_s25 + $0x60] sm:$0xff]   ;;  %1851 = vmatpush3.bf16.msra.mxu0 %v1936_v5  ;;  %1903 = vmatpush3.bf16.msra.mxu1 %v1936_v5  ;;  %v1807_v57 = vld [vmem:[%s2020_s25 + $0x70] sm:$0xff]   ;;  %v1808_v18 = vld [vmem:[%s2020_s25 + $0x78] sm:$0xff]  }
  0x15   : > { %v2060_v25 = vunpack.c.l.bf16 %v1797_v17  ;;  %v2062_v26 = vunpack.c.h.bf16 %v1797_v17  ;;  %v2083_v34 = vunpack.c.l.bf16 %v1805_v24  ;;  %v344_v35 = vmul.f32 %v2035_v12, %v2069_v28  ;;  %1852 = vmatprep.subr.bf16.mxu0 %v1937_v30  ;;  %1896 = vmatprep.subr.bf16.mxu1 %v1937_v30 }
  0x16   : > { %v345_v36 = vmul.f32 %v2037_v13, %v2069_v28  ;;  %v383_v37 = vmul.f32 %v2041_v15, %v2071_v29  ;;  %v384_v38 = vmul.f32 %v2048_v19, %v2071_v29  ;;  %v454_v40 = vmul.f32 %v2052_v21, %v2077_v31 }
  0x17   : > { %v455_v41 = vmul.f32 %v2054_v22, %v2077_v31  ;;  %v522_v42 = vmul.f32 %v2035_v12, %v2079_v32  ;;  %v523_v43 = vmul.f32 %v2037_v13, %v2079_v32  ;;  %v524_v46 = vmul.f32 %v1692_v14, %v2079_v32 }
  0x18   : > { %v415_v44 = vadd.f32 %v383_v37, %v344_v35  ;;  %v416_v45 = vadd.f32 %v384_v38, %v345_v36  ;;  %v2106_v47 = vunpack.c.h.bf16 %v1805_v24  ;;  %v574_v49 = vmul.f32 %v2041_v15, %v2081_v33  ;;  %1853 = vmatpush3.bf16.msra.mxu0 %v1937_v30  ;;  %1904 = vmatpush3.bf16.msra.mxu1 %v1937_v30  ;;  %v1940_v36 = vld [vmem:[%s3157_s2 + $0x38] sm:$0xff]  }
  0x19   : > { %v575_v50 = vmul.f32 %v2048_v19, %v2081_v33  ;;  %v576_v51 = vmul.f32 %v2050_v20, %v2081_v33  ;;  %v2117_v52 = vunpack.c.l.bf16 %v1806_v39  ;;  %v674_v62 = vmul.f32 %v2052_v21, %v2120_v55  ;;  %1854 = vmatprep.subr.bf16.mxu0 %v1938_v48  ;;  %1897 = vmatprep.subr.bf16.mxu1 %v1938_v48 }
  0x1a   : > { %v486_v53 = vadd.f32 %v454_v40, %v415_v44  ;;  %v487_v54 = vadd.f32 %v455_v41, %v416_v45  ;;  %v622_v58 = vadd.f32 %v574_v49, %v522_v42  ;;  %v675_v63 = vmul.f32 %v2054_v22, %v2120_v55 }
  0x1b   : > { %v623_v59 = vadd.f32 %v575_v50, %v523_v43  ;;  %v624_v60 = vadd.f32 %v576_v51, %v524_v46  ;;  %v676_v0 = vmul.f32 %v2060_v25, %v2120_v55  ;;  %v2135_v1 = vunpack.c.h.bf16 %v1806_v39  ;;  %v1809_v39 = vld [vmem:[%s2020_s25 + $0x80] sm:$0xff]  }
  0x1c   : > { %v889_v3 = vmul.f32 %v2035_v12, %v2123_v56  ;;  %v890_v5 = vmul.f32 %v2037_v13, %v2123_v56  ;;  %v891_v6 = vmul.f32 %v1692_v14, %v2123_v56  ;;  %v2148_v7 = vunpack.c.l.bf16 %v1807_v57  ;;  %1855 = vmatpush3.bf16.msra.mxu0 %v1938_v48  ;;  %1905 = vmatpush3.bf16.msra.mxu1 %v1938_v48 }
  0x1d   : > { %v722_v9 = vadd.f32 %v674_v62, %v622_v58  ;;  %v723_v10 = vadd.f32 %v675_v63, %v623_v59  ;;  %v724_v16 = vadd.f32 %v676_v0, %v624_v60  ;;  %v941_v17 = vmul.f32 %v2041_v15, %v2127_v61  ;;  %1856 = vmatprep.subr.bf16.mxu0 %v1939_v2  ;;  %v1798_v60 = vld [vmem:[%s2020_s25 + $0x28] sm:$0xff]  }
  0x1e   : > { %v942_v12 = vmul.f32 %v2048_v19, %v2127_v61  ;;  %v943_v13 = vmul.f32 %v2050_v20, %v2127_v61  ;;  %v2159_v8 = vrot.slane %v2067_v27, %v2033_v11  ;;  %v2161_v14 = vunpack.c.h.bf16 %v1807_v57  ;;  %1898 = vmatprep.subr.bf16.mxu1 %v1939_v2 }
  0x1f   : > { %v770_v23 = vrot.slane %v722_v9, 1  ;;  %v786_v24 = vrot.slane %v723_v10, 1  ;;  %v802_v30 = vrot.slane %v724_v16, 1  ;;  %v989_v35 = vadd.f32 %v941_v17, %v889_v3 }
  0x20   : > { %v990_v37 = vadd.f32 %v942_v12, %v890_v5  ;;  %v991_v38 = vadd.f32 %v943_v13, %v891_v6  ;;  %v1041_v11 = vmul.f32 %v2052_v21, %v2159_v8  ;;  %v2168_v27 = vunpack.c.l.bf16 %v1808_v18  ;;  %1857 = vmatpush3.bf16.msra.mxu0 %v1939_v2  ;;  %1906 = vmatpush3.bf16.msra.mxu1 %v1939_v2 }
  0x21   : > { %v821_v40 = vsel %vm820_vm0, %v786_v24, %v802_v30  ;;  %v837_v41 = vsel %vm820_vm0, %v770_v23, %v786_v24  ;;  %v1042_v42 = vmul.f32 %v2054_v22, %v2159_v8  ;;  %v1043_v43 = vmul.f32 %v2060_v25, %v2159_v8  ;;  %1858 = vmatprep.subr.bf16.mxu0 %v1940_v36 }
  0x22   : > { %v853_v44 = vadd.f32 %v837_v41, %v486_v53  ;;  %v854_v45 = vadd.f32 %v821_v40, %v487_v54  ;;  %v1089_v46 = vadd.f32 %v1041_v11, %v989_v35  ;;  %v2179_v48 = vunpack.c.h.bf16 %v1808_v18  ;;  %1899 = vmatprep.subr.bf16.mxu1 %v1940_v36 }
  0x23   : > { %v1090_v49 = vadd.f32 %v1042_v42, %v990_v37  ;;  %v1091_v50 = vadd.f32 %v1043_v43, %v991_v38  ;;  %v2181_v51 = vunpack.c.l.bf16 %v1809_v39  ;;  %v2183_v57 = vunpack.c.h.bf16 %v1809_v39 }
  0x24   : > { %v1137_v58 = vrot.slane %v1089_v46, 2  ;;  %v360_v59 = vmul.f32 %v2083_v34, %v2069_v28  ;;  %v361_v53 = vmul.f32 %v2106_v47, %v2069_v28  ;;  %v399_v54 = vmul.f32 %v2135_v1, %v2071_v29  ;;  %1859 = vmatpush3.bf16.msra.mxu0 %v1940_v36  ;;  %1907 = vmatpush3.bf16.msra.mxu1 %v1940_v36 }
  0x25   : > { %v1153_v62 = vrot.slane %v1090_v49, 2  ;;  %v1169_v63 = vrot.slane %v1091_v50, 2  ;;  %v400_v0 = vmul.f32 %v2148_v7, %v2071_v29  ;;  %v470_v2 = vmul.f32 %v2168_v27, %v2077_v31 }
  0x26   : > { %v431_v3 = vadd.f32 %v399_v54, %v360_v59  ;;  %v471_v5 = vmul.f32 %v2179_v48, %v2077_v31  ;;  %v546_v6 = vmul.f32 %v2083_v34, %v2079_v32  ;;  %v547_v9 = vmul.f32 %v2106_v47, %v2079_v32 }
  0x27   : > { %v1186_v10 = vsel %vm1185_vm1, %v1153_v62, %v1169_v63  ;;  %v1202_v16 = vsel %vm1185_vm1, %v1137_v58, %v1153_v62  ;;  %v432_v17 = vadd.f32 %v400_v0, %v361_v53  ;;  %v2206_v18 = vunpack.c.l.bf16 %v1798_v60 }
  0x28   : > { %v1218_v12 = vadd.f32 %v1202_v16, %v853_v44  ;;  %v1219_v13 = vadd.f32 %v1186_v10, %v854_v45  ;;  %v502_v23 = vadd.f32 %v470_v2, %v431_v3  ;;  %v548_v24 = vmul.f32 %v2117_v52, %v2079_v32 }
  0x29   : > { %v503_v30 = vadd.f32 %v471_v5, %v432_v17  ;;  %v598_v35 = vmul.f32 %v2135_v1, %v2081_v33  ;;  %v599_v36 = vmul.f32 %v2148_v7, %v2081_v33  ;;  %v600_v37 = vmul.f32 %v2161_v14, %v2081_v33 }
  0x2a   : > { %v1250_v38 = vpack.c.bf16 %v1219_v13, %v1218_v12  ;;  %v698_v11 = vmul.f32 %v2168_v27, %v2120_v55  ;;  %v699_v39 = vmul.f32 %v2179_v48, %v2120_v55  ;;  %v700_v40 = vmul.f32 %v2181_v51, %v2120_v55 }
  0x2b   : > { %v646_v41 = vadd.f32 %v598_v35, %v546_v6  ;;  %v647_v42 = vadd.f32 %v599_v36, %v547_v9  ;;  %v648_v43 = vadd.f32 %v600_v37, %v548_v24  ;;  %v913_v44 = vmul.f32 %v2083_v34, %v2123_v56 }
  0x2c   : > { %1860 = vmatprep.mubr.bf16.mxu0 %v1250_v38  ;;  %v914_v45 = vmul.f32 %v2106_v47, %v2123_v56  ;;  %v915_v46 = vmul.f32 %v2117_v52, %v2123_v56  ;;  %v965_v49 = vmul.f32 %v2135_v1, %v2127_v61  ;;  %v966_v50 = vmul.f32 %v2148_v7, %v2127_v61 }
  0x2d   : > { %v746_v58 = vadd.f32 %v698_v11, %v646_v41  ;;  %v747_v59 = vadd.f32 %v699_v39, %v647_v42  ;;  %v748_v53 = vadd.f32 %v700_v40, %v648_v43  ;;  %v967_v54 = vmul.f32 %v2161_v14, %v2127_v61 }
  0x2e   : > { %v1013_v62 = vadd.f32 %v965_v49, %v913_v44  ;;  %v1014_v63 = vadd.f32 %v966_v50, %v914_v45  ;;  %v1065_v0 = vmul.f32 %v2168_v27, %v2159_v8  ;;  %v1066_v2 = vmul.f32 %v2179_v48, %v2159_v8 }
  0x2f   : > { %v778_v3 = vrot.slane %v746_v58, 1  ;;  %v794_v5 = vrot.slane %v747_v59, 1  ;;  %v810_v6 = vrot.slane %v748_v53, 1  ;;  %v1015_v9 = vadd.f32 %v967_v54, %v915_v46 }
  0x30   : > { %v1067_v10 = vmul.f32 %v2181_v51, %v2159_v8  ;;  %v1113_v16 = vadd.f32 %v1065_v0, %v1013_v62  ;;  %v1114_v17 = vadd.f32 %v1066_v2, %v1014_v63  ;;  %v2240_v12 = vunpack.c.h.bf16 %v1798_v60 }
  0x31   : > { %v829_v13 = vsel %vm820_vm0, %v794_v5, %v810_v6  ;;  %v845_v24 = vsel %vm820_vm0, %v778_v3, %v794_v5  ;;  %v346_v35 = vmul.f32 %v2041_v15, %v2069_v28  ;;  %v347_v36 = vmul.f32 %v2048_v19, %v2069_v28 }
  0x32   : > { %v869_v37 = vadd.f32 %v845_v24, %v502_v23  ;;  %v870_v38 = vadd.f32 %v829_v13, %v503_v30  ;;  %v1115_v11 = vadd.f32 %v1067_v10, %v1015_v9  ;;  %v1145_v39 = vrot.slane %v1113_v16, 2 }
  0x33   : > { %v1161_v40 = vrot.slane %v1114_v17, 2  ;;  %v385_v60 = vmul.f32 %v2052_v21, %v2071_v29  ;;  %v386_v41 = vmul.f32 %v2054_v22, %v2071_v29  ;;  %v456_v42 = vmul.f32 %v2062_v26, %v2077_v31 }
  0x34   : > { %v1177_v43 = vrot.slane %v1115_v11, 2  ;;  %v457_v44 = vmul.f32 %v2206_v18, %v2077_v31  ;;  %v525_v23 = vmul.f32 %v2041_v15, %v2079_v32  ;;  %v526_v30 = vmul.f32 %v2048_v19, %v2079_v32 }
  0x35   : > { %v1210_v45 = vsel %vm1185_vm1, %v1145_v39, %v1161_v40  ;;  %v417_v46 = vadd.f32 %v385_v60, %v346_v35  ;;  %v418_v49 = vadd.f32 %v386_v41, %v347_v36  ;;  %v527_v50 = vmul.f32 %v2050_v20, %v2079_v32 }
  0x36   : > { %v1194_v58 = vsel %vm1185_vm1, %v1161_v40, %v1177_v43  ;;  %v1234_v59 = vadd.f32 %v1210_v45, %v869_v37  ;;  %v577_v53 = vmul.f32 %v2052_v21, %v2081_v33  ;;  %v578_v54 = vmul.f32 %v2054_v22, %v2081_v33 }
  0x37   : > { %v1235_v62 = vadd.f32 %v1194_v58, %v870_v38  ;;  %v488_v63 = vadd.f32 %v456_v42, %v417_v46  ;;  %v489_v0 = vadd.f32 %v457_v44, %v418_v49  ;;  %v579_v2 = vmul.f32 %v2060_v25, %v2081_v33 }
  0x38   : > { %v625_v3 = vadd.f32 %v577_v53, %v525_v23  ;;  %v626_v5 = vadd.f32 %v578_v54, %v526_v30  ;;  %v677_v6 = vmul.f32 %v2062_v26, %v2120_v55  ;;  %v678_v9 = vmul.f32 %v2206_v18, %v2120_v55 }
  0x39   : > { %v1258_v10 = vpack.c.bf16 %v1235_v62, %v1234_v59  ;;  %v627_v16 = vadd.f32 %v579_v2, %v527_v50  ;;  %v679_v17 = vmul.f32 %v2240_v12, %v2120_v55  ;;  %v892_v13 = vmul.f32 %v2041_v15, %v2123_v56  ;;  %v1810_v15 = vld [vmem:[%s2020_s25 + $0x88] sm:$0xff]  }
  0x3a   : > { %v725_v24 = vadd.f32 %v677_v6, %v625_v3  ;;  %v726_v35 = vadd.f32 %v678_v9, %v626_v5  ;;  %v893_v36 = vmul.f32 %v2048_v19, %v2123_v56  ;;  %v894_v37 = vmul.f32 %v2050_v20, %v2123_v56 }
  0x3b   : > { %1876 = vmatprep.mubr.bf16.mxu1 %v1258_v10  ;;  %v727_v38 = vadd.f32 %v679_v17, %v627_v16  ;;  %v944_v11 = vmul.f32 %v2052_v21, %v2127_v61  ;;  %v945_v39 = vmul.f32 %v2054_v22, %v2127_v61  ;;  %v946_v40 = vmul.f32 %v2060_v25, %v2127_v61 }
  0x3c   : > { %v771_v60 = vrot.slane %v725_v24, 1  ;;  %v787_v41 = vrot.slane %v726_v35, 1  ;;  %v1044_v19 = vmul.f32 %v2062_v26, %v2159_v8  ;;  %v1045_v20 = vmul.f32 %v2206_v18, %v2159_v8 }
  0x3d   : > { %v803_v42 = vrot.slane %v727_v38, 1  ;;  %v992_v43 = vadd.f32 %v944_v11, %v892_v13  ;;  %v993_v44 = vadd.f32 %v945_v39, %v893_v36  ;;  %v994_v23 = vadd.f32 %v946_v40, %v894_v37 }
  0x3e   : > { %v838_v30 = vsel %vm820_vm0, %v771_v60, %v787_v41  ;;  %v1046_v45 = vmul.f32 %v2240_v12, %v2159_v8  ;;  %v2301_v46 = vunpack.c.l.bf16 %v1810_v15  ;;  %v2303_v49 = vunpack.c.h.bf16 %v1810_v15 }
  0x3f   : > { %v822_v50 = vsel %vm820_vm0, %v787_v41, %v803_v42  ;;  %v855_v58 = vadd.f32 %v838_v30, %v488_v63  ;;  %v1092_v59 = vadd.f32 %v1044_v19, %v992_v43  ;;  %v1093_v53 = vadd.f32 %v1045_v20, %v993_v44 }
  0x40   : > { %v856_v54 = vadd.f32 %v822_v50, %v489_v0  ;;  %v1094_v62 = vadd.f32 %v1046_v45, %v994_v23  ;;  %v362_v2 = vmul.f32 %v2135_v1, %v2069_v28  ;;  %v363_v3 = vmul.f32 %v2148_v7, %v2069_v28 }
  0x41   : > { %v1138_v5 = vrot.slane %v1092_v59, 2  ;;  %v1154_v6 = vrot.slane %v1093_v53, 2  ;;  %v401_v9 = vmul.f32 %v2168_v27, %v2071_v29  ;;  %v402_v10 = vmul.f32 %v2179_v48, %v2071_v29 }
  0x42   : > { %v1170_v16 = vrot.slane %v1094_v62, 2  ;;  %v472_v63 = vmul.f32 %v2183_v57, %v2077_v31  ;;  %v473_v0 = vmul.f32 %v2301_v46, %v2077_v31  ;;  %v549_v17 = vmul.f32 %v2135_v1, %v2079_v32 }
  0x43   : > { %v1203_v13 = vsel %vm1185_vm1, %v1138_v5, %v1154_v6  ;;  %v433_v24 = vadd.f32 %v401_v9, %v362_v2  ;;  %v434_v35 = vadd.f32 %v402_v10, %v363_v3  ;;  %v550_v36 = vmul.f32 %v2148_v7, %v2079_v32  ;;  %v1799_v5 = vld [vmem:[%s2020_s25 + $0x30] sm:$0xff]  }
  0x44   : > { %v1187_v37 = vsel %vm1185_vm1, %v1154_v6, %v1170_v16  ;;  %v1220_v38 = vadd.f32 %v1203_v13, %v855_v58  ;;  %v551_v11 = vmul.f32 %v2161_v14, %v2079_v32  ;;  %v601_v39 = vmul.f32 %v2168_v27, %v2081_v33 }
  0x45   : > { %v1221_v40 = vadd.f32 %v1187_v37, %v856_v54  ;;  %v504_v15 = vadd.f32 %v472_v63, %v433_v24  ;;  %v505_v60 = vadd.f32 %v473_v0, %v434_v35  ;;  %v602_v41 = vmul.f32 %v2179_v48, %v2081_v33  ;;  %v1800_v63 = vld [vmem:[%s2020_s25 + $0x38] sm:$0xff]  }
  0x46   : > { %v603_v19 = vmul.f32 %v2181_v51, %v2081_v33  ;;  %v649_v20 = vadd.f32 %v601_v39, %v549_v17  ;;  %v701_v42 = vmul.f32 %v2183_v57, %v2120_v55  ;;  %v702_v43 = vmul.f32 %v2301_v46, %v2120_v55 }
  0x47   : > { %v1251_v44 = vpack.c.bf16 %v1221_v40, %v1220_v38  ;;  %v650_v23 = vadd.f32 %v602_v41, %v550_v36  ;;  %v703_v30 = vmul.f32 %v2303_v49, %v2120_v55  ;;  %v916_v45 = vmul.f32 %v2135_v1, %v2123_v56 }
  0x48   : > { %v651_v50 = vadd.f32 %v603_v19, %v551_v11  ;;  %v749_v58 = vadd.f32 %v701_v42, %v649_v20  ;;  %v917_v59 = vmul.f32 %v2148_v7, %v2123_v56  ;;  %v918_v53 = vmul.f32 %v2161_v14, %v2123_v56 }
  0x49   : > { %1861 = vmatmul.mubr.bf16.vlgmr.msra.gmra.mrb[0].mxu0 %v1251_v44  ;;  %v750_v54 = vadd.f32 %v702_v43, %v650_v23  ;;  %v968_v62 = vmul.f32 %v2168_v27, %v2127_v61  ;;  %v969_v2 = vmul.f32 %v2179_v48, %v2127_v61  ;;  %v970_v3 = vmul.f32 %v2181_v51, %v2127_v61 }
  0x4a   : > { %v751_v6 = vadd.f32 %v703_v30, %v651_v50  ;;  %v779_v9 = vrot.slane %v749_v58, 1  ;;  %v1068_v10 = vmul.f32 %v2183_v57, %v2159_v8  ;;  %v1069_v16 = vmul.f32 %v2301_v46, %v2159_v8 }
  0x4b   : > { %v795_v0 = vrot.slane %v750_v54, 1  ;;  %v1016_v17 = vadd.f32 %v968_v62, %v916_v45  ;;  %v1017_v13 = vadd.f32 %v969_v2, %v917_v59  ;;  %v1018_v24 = vadd.f32 %v970_v3, %v918_v53 }
  0x4c   : > { %v811_v35 = vrot.slane %v751_v6, 1  ;;  %v1070_v36 = vmul.f32 %v2303_v49, %v2159_v8  ;;  %v2361_v37 = vunpack.c.l.bf16 %v1799_v5  ;;  %v2363_v38 = vunpack.c.h.bf16 %v1799_v5 }
  0x4d   : > { %v846_v11 = vsel %vm820_vm0, %v779_v9, %v795_v0  ;;  %v1116_v39 = vadd.f32 %v1068_v10, %v1016_v17  ;;  %v1117_v40 = vadd.f32 %v1069_v16, %v1017_v13  ;;  %v2367_v41 = vunpack.c.l.bf16 %v1800_v63 }
  0x4e   : > { %v830_v19 = vsel %vm820_vm0, %v795_v0, %v811_v35  ;;  %v871_v20 = vadd.f32 %v846_v11, %v504_v15  ;;  %v1118_v42 = vadd.f32 %v1070_v36, %v1018_v24  ;;  %v2371_v43 = vunpack.c.h.bf16 %v1800_v63 }
  0x4f   : > { %v872_v44 = vadd.f32 %v830_v19, %v505_v60  ;;  %v1146_v23 = vrot.slane %v1116_v39, 2  ;;  %v1162_v30 = vrot.slane %v1117_v40, 2  ;;  %v348_v45 = vmul.f32 %v2052_v21, %v2069_v28 }
  0x50   : > { %v1178_v50 = vrot.slane %v1118_v42, 2  ;;  %v349_v58 = vmul.f32 %v2054_v22, %v2069_v28  ;;  %v387_v59 = vmul.f32 %v2062_v26, %v2071_v29  ;;  %v388_v53 = vmul.f32 %v2206_v18, %v2071_v29 }
  0x51   : > { %v1211_v15 = vsel %vm1185_vm1, %v1146_v23, %v1162_v30  ;;  %v458_v60 = vmul.f32 %v2361_v37, %v2077_v31  ;;  %v459_v54 = vmul.f32 %v2363_v38, %v2077_v31  ;;  %v528_v62 = vmul.f32 %v2052_v21, %v2079_v32 }
  0x52   : > { %v1195_v2 = vsel %vm1185_vm1, %v1162_v30, %v1178_v50  ;;  %v1236_v3 = vadd.f32 %v1211_v15, %v871_v20  ;;  %v419_v5 = vadd.f32 %v387_v59, %v348_v45  ;;  %v420_v6 = vadd.f32 %v388_v53, %v349_v58 }
  0x53   : > { %v1237_v9 = vadd.f32 %v1195_v2, %v872_v44  ;;  %v529_v10 = vmul.f32 %v2054_v22, %v2079_v32  ;;  %v530_v16 = vmul.f32 %v2060_v25, %v2079_v32  ;;  %v580_v63 = vmul.f32 %v2062_v26, %v2081_v33 }
  0x54   : > { %v490_v0 = vadd.f32 %v458_v60, %v419_v5  ;;  %v491_v17 = vadd.f32 %v459_v54, %v420_v6  ;;  %v581_v13 = vmul.f32 %v2206_v18, %v2081_v33  ;;  %v582_v24 = vmul.f32 %v2240_v12, %v2081_v33  ;;  %v1812_v54 = vld [vmem:[%s2020_s25 + $0x98] sm:$0xff]  }
  0x55   : > { %v1259_v35 = vpack.c.bf16 %v1237_v9, %v1236_v3  ;;  %v628_v36 = vadd.f32 %v580_v63, %v528_v62  ;;  %v680_v11 = vmul.f32 %v2361_v37, %v2120_v55  ;;  %v681_v39 = vmul.f32 %v2363_v38, %v2120_v55 }
  0x56   : > { %v629_v40 = vadd.f32 %v581_v13, %v529_v10  ;;  %v630_v19 = vadd.f32 %v582_v24, %v530_v16  ;;  %v682_v20 = vmul.f32 %v2367_v41, %v2120_v55  ;;  %v895_v42 = vmul.f32 %v2052_v21, %v2123_v56  ;;  %v1811_v21 = vld [vmem:[%s2020_s25 + $0x90] sm:$0xff]  }
  0x57   : > { %1877 = vmatmul.mubr.bf16.vlgmr.msra.gmra.mrb[0].mxu1 %v1259_v35  ;;  %v728_v44 = vadd.f32 %v680_v11, %v628_v36  ;;  %v896_v23 = vmul.f32 %v2054_v22, %v2123_v56  ;;  %v897_v30 = vmul.f32 %v2060_v25, %v2123_v56  ;;  %v947_v45 = vmul.f32 %v2062_v26, %v2127_v61 }
  0x58   : > { %v729_v50 = vadd.f32 %v681_v39, %v629_v40  ;;  %v730_v58 = vadd.f32 %v682_v20, %v630_v19  ;;  %v948_v59 = vmul.f32 %v2206_v18, %v2127_v61  ;;  %v949_v53 = vmul.f32 %v2240_v12, %v2127_v61 }
  0x59   : > { %v772_v15 = vrot.slane %v728_v44, 1  ;;  %v995_v60 = vadd.f32 %v947_v45, %v895_v42  ;;  %v1047_v22 = vmul.f32 %v2361_v37, %v2159_v8  ;;  %v1048_v25 = vmul.f32 %v2363_v38, %v2159_v8 }
  0x5a   : > { %v788_v62 = vrot.slane %v729_v50, 1  ;;  %v804_v2 = vrot.slane %v730_v58, 1  ;;  %v996_v3 = vadd.f32 %v948_v59, %v896_v23  ;;  %v997_v5 = vadd.f32 %v949_v53, %v897_v30 }
  0x5b   : > { %v1049_v6 = vmul.f32 %v2367_v41, %v2159_v8  ;;  %v1095_v9 = vadd.f32 %v1047_v22, %v995_v60  ;;  %v2427_v10 = vunpack.c.l.bf16 %v1811_v21  ;;  %v2429_v16 = vunpack.c.h.bf16 %v1811_v21 }
  0x5c   : > { %v823_v63 = vsel %vm820_vm0, %v788_v62, %v804_v2  ;;  %v839_v13 = vsel %vm820_vm0, %v772_v15, %v788_v62  ;;  %v1096_v24 = vadd.f32 %v1048_v25, %v996_v3  ;;  %v2435_v35 = vunpack.c.l.bf16 %v1812_v54 }
  0x5d   : > { %v857_v36 = vadd.f32 %v839_v13, %v490_v0  ;;  %v858_v11 = vadd.f32 %v823_v63, %v491_v17  ;;  %v1097_v39 = vadd.f32 %v1049_v6, %v997_v5  ;;  %v1139_v40 = vrot.slane %v1095_v9, 2 }
  0x5e   : > { %v1155_v19 = vrot.slane %v1096_v24, 2  ;;  %v2437_v20 = vunpack.c.h.bf16 %v1812_v54  ;;  %v364_v42 = vmul.f32 %v2168_v27, %v2069_v28  ;;  %v365_v44 = vmul.f32 %v2179_v48, %v2069_v28 }
  0x5f   : > { %v1171_v23 = vrot.slane %v1097_v39, 2  ;;  %v403_v30 = vmul.f32 %v2183_v57, %v2071_v29  ;;  %v404_v45 = vmul.f32 %v2301_v46, %v2071_v29  ;;  %v474_v0 = vmul.f32 %v2427_v10, %v2077_v31 }
  0x60   : > { %v1204_v17 = vsel %vm1185_vm1, %v1139_v40, %v1155_v19  ;;  %v475_v50 = vmul.f32 %v2429_v16, %v2077_v31  ;;  %v552_v58 = vmul.f32 %v2168_v27, %v2079_v32  ;;  %v553_v59 = vmul.f32 %v2179_v48, %v2079_v32 }
  0x61   : > { %v1188_v53 = vsel %vm1185_vm1, %v1155_v19, %v1171_v23  ;;  %v1222_v21 = vadd.f32 %v1204_v17, %v857_v36  ;;  %v435_v15 = vadd.f32 %v403_v30, %v364_v42  ;;  %v436_v60 = vadd.f32 %v404_v45, %v365_v44 }
  0x62   : > { %v1223_v22 = vadd.f32 %v1188_v53, %v858_v11  ;;  %v554_v25 = vmul.f32 %v2181_v51, %v2079_v32  ;;  %v604_v54 = vmul.f32 %v2183_v57, %v2081_v33  ;;  %v605_v62 = vmul.f32 %v2301_v46, %v2081_v33 }
  0x63   : > { %v506_v2 = vadd.f32 %v474_v0, %v435_v15  ;;  %v507_v3 = vadd.f32 %v475_v50, %v436_v60  ;;  %v606_v5 = vmul.f32 %v2303_v49, %v2081_v33  ;;  %v704_v6 = vmul.f32 %v2427_v10, %v2120_v55 }
  0x64   : > { %v1252_v9 = vpack.c.bf16 %v1223_v22, %v1222_v21  ;;  %v652_v63 = vadd.f32 %v604_v54, %v552_v58  ;;  %v653_v13 = vadd.f32 %v605_v62, %v553_v59  ;;  %v705_v24 = vmul.f32 %v2429_v16, %v2120_v55 }
  0x65   : > { %v654_v36 = vadd.f32 %v606_v5, %v554_v25  ;;  %v706_v11 = vmul.f32 %v2435_v35, %v2120_v55  ;;  %v919_v39 = vmul.f32 %v2168_v27, %v2123_v56  ;;  %v920_v40 = vmul.f32 %v2179_v48, %v2123_v56  ;;  %v1801_v48 = vld [vmem:[%s2020_s25 + $0x40] sm:$0xff]  }
  0x66   : > { %1864 = vmatprep.mubr.bf16.mxu0 %v1252_v9  ;;  %v752_v19 = vadd.f32 %v704_v6, %v652_v63  ;;  %v753_v42 = vadd.f32 %v705_v24, %v653_v13  ;;  %v921_v44 = vmul.f32 %v2181_v51, %v2123_v56  ;;  %v971_v23 = vmul.f32 %v2183_v57, %v2127_v61 }
  0x67   : > { %v754_v30 = vadd.f32 %v706_v11, %v654_v36  ;;  %v972_v45 = vmul.f32 %v2301_v46, %v2127_v61  ;;  %v973_v0 = vmul.f32 %v2303_v49, %v2127_v61  ;;  %v1071_v27 = vmul.f32 %v2427_v10, %v2159_v8 }
  0x68   : > { %v780_v17 = vrot.slane %v752_v19, 1  ;;  %v796_v50 = vrot.slane %v753_v42, 1  ;;  %v1019_v58 = vadd.f32 %v971_v23, %v919_v39  ;;  %v1072_v51 = vmul.f32 %v2429_v16, %v2159_v8 }
  0x69   : > { %v812_v59 = vrot.slane %v754_v30, 1  ;;  %v1020_v53 = vadd.f32 %v972_v45, %v920_v40  ;;  %v1021_v21 = vadd.f32 %v973_v0, %v921_v44  ;;  %v1073_v15 = vmul.f32 %v2435_v35, %v2159_v8 }
  0x6a   : > { %v847_v60 = vsel %vm820_vm0, %v780_v17, %v796_v50  ;;  %v1119_v22 = vadd.f32 %v1071_v27, %v1019_v58  ;;  %v2494_v25 = vunpack.c.l.bf16 %v1801_v48  ;;  %v2496_v54 = vunpack.c.h.bf16 %v1801_v48 }
  0x6b   : > { %v831_v62 = vsel %vm820_vm0, %v796_v50, %v812_v59  ;;  %v873_v5 = vadd.f32 %v847_v60, %v506_v2  ;;  %v1120_v6 = vadd.f32 %v1072_v51, %v1020_v53  ;;  %v1121_v9 = vadd.f32 %v1073_v15, %v1021_v21 }
  0x6c   : > { %v874_v63 = vadd.f32 %v831_v62, %v507_v3  ;;  %v1147_v13 = vrot.slane %v1119_v22, 2  ;;  %v350_v24 = vmul.f32 %v2062_v26, %v2069_v28  ;;  %v351_v36 = vmul.f32 %v2206_v18, %v2069_v28 }
  0x6d   : > { %v1163_v11 = vrot.slane %v1120_v6, 2  ;;  %v1179_v39 = vrot.slane %v1121_v9, 2  ;;  %v389_v40 = vmul.f32 %v2361_v37, %v2071_v29  ;;  %v390_v19 = vmul.f32 %v2363_v38, %v2071_v29 }
  0x6e   : > { %v460_v2 = vmul.f32 %v2371_v43, %v2077_v31  ;;  %v461_v3 = vmul.f32 %v2494_v25, %v2077_v31  ;;  %v531_v42 = vmul.f32 %v2062_v26, %v2079_v32  ;;  %v532_v44 = vmul.f32 %v2206_v18, %v2079_v32 }
  0x6f   : > { %v1196_v23 = vsel %vm1185_vm1, %v1163_v11, %v1179_v39  ;;  %v1212_v30 = vsel %vm1185_vm1, %v1147_v13, %v1163_v11  ;;  %v421_v45 = vadd.f32 %v389_v40, %v350_v24  ;;  %v422_v0 = vadd.f32 %v390_v19, %v351_v36 }
  0x70   : > { %v1238_v27 = vadd.f32 %v1212_v30, %v873_v5  ;;  %v1239_v48 = vadd.f32 %v1196_v23, %v874_v63  ;;  %v533_v17 = vmul.f32 %v2240_v12, %v2079_v32  ;;  %v583_v50 = vmul.f32 %v2361_v37, %v2081_v33 }
  0x71   : > { %v492_v58 = vadd.f32 %v460_v2, %v421_v45  ;;  %v493_v51 = vadd.f32 %v461_v3, %v422_v0  ;;  %v584_v59 = vmul.f32 %v2363_v38, %v2081_v33  ;;  %v585_v53 = vmul.f32 %v2367_v41, %v2081_v33 }
  0x72   : > { %v1260_v21 = vpack.c.bf16 %v1239_v48, %v1238_v27  ;;  %v631_v15 = vadd.f32 %v583_v50, %v531_v42  ;;  %v683_v60 = vmul.f32 %v2371_v43, %v2120_v55  ;;  %v684_v22 = vmul.f32 %v2494_v25, %v2120_v55 }
  0x73   : > { %v632_v62 = vadd.f32 %v584_v59, %v532_v44  ;;  %v633_v5 = vadd.f32 %v585_v53, %v533_v17  ;;  %v685_v6 = vmul.f32 %v2496_v54, %v2120_v55  ;;  %v898_v9 = vmul.f32 %v2062_v26, %v2123_v56  ;;  %v1813_v26 = vld [vmem:[%s2020_s25 + $0xa0] sm:$0xff]  }
  0x74   : > { %1880 = vmatprep.mubr.bf16.mxu1 %v1260_v21  ;;  %v731_v63 = vadd.f32 %v683_v60, %v631_v15  ;;  %v899_v13 = vmul.f32 %v2206_v18, %v2123_v56  ;;  %v900_v24 = vmul.f32 %v2240_v12, %v2123_v56  ;;  %v950_v36 = vmul.f32 %v2361_v37, %v2127_v61 }
  0x75   : > { %v732_v11 = vadd.f32 %v684_v22, %v632_v62  ;;  %v733_v39 = vadd.f32 %v685_v6, %v633_v5  ;;  %v951_v40 = vmul.f32 %v2363_v38, %v2127_v61  ;;  %v952_v19 = vmul.f32 %v2367_v41, %v2127_v61 }
  0x76   : > { %v773_v2 = vrot.slane %v731_v63, 1  ;;  %v998_v3 = vadd.f32 %v950_v36, %v898_v9  ;;  %v1050_v18 = vmul.f32 %v2371_v43, %v2159_v8  ;;  %v1051_v12 = vmul.f32 %v2494_v25, %v2159_v8 }
  0x77   : > { %v789_v42 = vrot.slane %v732_v11, 1  ;;  %v805_v44 = vrot.slane %v733_v39, 1  ;;  %v999_v23 = vadd.f32 %v951_v40, %v899_v13  ;;  %v1000_v30 = vadd.f32 %v952_v19, %v900_v24 }
  0x78   : > { %v1052_v45 = vmul.f32 %v2496_v54, %v2159_v8  ;;  %v1098_v0 = vadd.f32 %v1050_v18, %v998_v3  ;;  %v2553_v27 = vunpack.c.l.bf16 %v1813_v26  ;;  %v2555_v48 = vunpack.c.h.bf16 %v1813_v26 }
  0x79   : > { %v824_v17 = vsel %vm820_vm0, %v789_v42, %v805_v44  ;;  %v840_v50 = vsel %vm820_vm0, %v773_v2, %v789_v42  ;;  %v1099_v59 = vadd.f32 %v1051_v12, %v999_v23  ;;  %v366_v53 = vmul.f32 %v2183_v57, %v2069_v28 }
  0x7a   : > { %v859_v21 = vadd.f32 %v840_v50, %v492_v58  ;;  %v860_v15 = vadd.f32 %v824_v17, %v493_v51  ;;  %v1100_v60 = vadd.f32 %v1052_v45, %v1000_v30  ;;  %v1140_v22 = vrot.slane %v1098_v0, 2 }
  0x7b   : > { %v1156_v62 = vrot.slane %v1099_v59, 2  ;;  %v367_v5 = vmul.f32 %v2301_v46, %v2069_v28  ;;  %v405_v6 = vmul.f32 %v2427_v10, %v2071_v29  ;;  %v406_v9 = vmul.f32 %v2429_v16, %v2071_v29 }
  0x7c   : > { %v1172_v63 = vrot.slane %v1100_v60, 2  ;;  %v476_v13 = vmul.f32 %v2437_v20, %v2077_v31  ;;  %v477_v58 = vmul.f32 %v2553_v27, %v2077_v31  ;;  %v555_v51 = vmul.f32 %v2183_v57, %v2079_v32 }
  0x7d   : > { %v1205_v24 = vsel %vm1185_vm1, %v1140_v22, %v1156_v62  ;;  %v437_v36 = vadd.f32 %v405_v6, %v366_v53  ;;  %v438_v11 = vadd.f32 %v406_v9, %v367_v5  ;;  %v556_v39 = vmul.f32 %v2301_v46, %v2079_v32 }
  0x7e   : > { %v1189_v40 = vsel %vm1185_vm1, %v1156_v62, %v1172_v63  ;;  %v1224_v19 = vadd.f32 %v1205_v24, %v859_v21  ;;  %v557_v26 = vmul.f32 %v2303_v49, %v2079_v32  ;;  %v607_v2 = vmul.f32 %v2427_v10, %v2081_v33 }
  0x7f   : > { %v1225_v3 = vadd.f32 %v1189_v40, %v860_v15  ;;  %v508_v18 = vadd.f32 %v476_v13, %v437_v36  ;;  %v509_v12 = vadd.f32 %v477_v58, %v438_v11  ;;  %v608_v42 = vmul.f32 %v2429_v16, %v2081_v33  ;;  %v1803_v13 = vld [vmem:[%s2020_s25 + $0x50] sm:$0xff]  }
  0x80   : > { %v609_v44 = vmul.f32 %v2435_v35, %v2081_v33  ;;  %v655_v23 = vadd.f32 %v607_v2, %v555_v51  ;;  %v707_v30 = vmul.f32 %v2437_v20, %v2120_v55  ;;  %v708_v45 = vmul.f32 %v2553_v27, %v2120_v55 }
  0x81   : > { %v1253_v0 = vpack.c.bf16 %v1225_v3, %v1224_v19  ;;  %v656_v17 = vadd.f32 %v608_v42, %v556_v39  ;;  %v709_v50 = vmul.f32 %v2555_v48, %v2120_v55  ;;  %v922_v59 = vmul.f32 %v2183_v57, %v2123_v56  ;;  %v1802_v57 = vld [vmem:[%s2020_s25 + $0x48] sm:$0xff]  }
  0x82   : > { %v657_v53 = vadd.f32 %v609_v44, %v557_v26  ;;  %v755_v21 = vadd.f32 %v707_v30, %v655_v23  ;;  %v923_v15 = vmul.f32 %v2301_v46, %v2123_v56  ;;  %v924_v60 = vmul.f32 %v2303_v49, %v2123_v56 }
  0x83   : > { %1865 = vmatmul.mubr.bf16.gmra.mrb[4].mxu0 %v1253_v0  ;;  %v756_v22 = vadd.f32 %v708_v45, %v656_v17  ;;  %v974_v62 = vmul.f32 %v2427_v10, %v2127_v61  ;;  %v975_v5 = vmul.f32 %v2429_v16, %v2127_v61  ;;  %v976_v6 = vmul.f32 %v2435_v35, %v2127_v61 }
  0x84   : > { %v757_v9 = vadd.f32 %v709_v50, %v657_v53  ;;  %v781_v63 = vrot.slane %v755_v21, 1  ;;  %v1074_v46 = vmul.f32 %v2437_v20, %v2159_v8  ;;  %v1075_v49 = vmul.f32 %v2553_v27, %v2159_v8 }
  0x85   : > { %v797_v58 = vrot.slane %v756_v22, 1  ;;  %v1022_v51 = vadd.f32 %v974_v62, %v922_v59  ;;  %v1023_v24 = vadd.f32 %v975_v5, %v923_v15  ;;  %v1024_v36 = vadd.f32 %v976_v6, %v924_v60 }
  0x86   : > { %v813_v11 = vrot.slane %v757_v9, 1  ;;  %v1076_v39 = vmul.f32 %v2555_v48, %v2159_v8  ;;  %v2615_v40 = vunpack.c.l.bf16 %v1802_v57  ;;  %v2617_v19 = vunpack.c.h.bf16 %v1802_v57 }
  0x87   : > { %v848_v26 = vsel %vm820_vm0, %v781_v63, %v797_v58  ;;  %v1122_v2 = vadd.f32 %v1074_v46, %v1022_v51  ;;  %v1123_v3 = vadd.f32 %v1075_v49, %v1023_v24  ;;  %v2621_v42 = vunpack.c.l.bf16 %v1803_v13 }
  0x88   : > { %v832_v44 = vsel %vm820_vm0, %v797_v58, %v813_v11  ;;  %v875_v23 = vadd.f32 %v848_v26, %v508_v18  ;;  %v1124_v30 = vadd.f32 %v1076_v39, %v1024_v36  ;;  %v2625_v45 = vunpack.c.h.bf16 %v1803_v13 }
  0x89   : > { %v876_v0 = vadd.f32 %v832_v44, %v509_v12  ;;  %v1148_v17 = vrot.slane %v1122_v2, 2  ;;  %v1164_v50 = vrot.slane %v1123_v3, 2  ;;  %v352_v59 = vmul.f32 %v2361_v37, %v2069_v28 }
  0x8a   : > { %v1180_v53 = vrot.slane %v1124_v30, 2  ;;  %v353_v21 = vmul.f32 %v2363_v38, %v2069_v28  ;;  %v391_v15 = vmul.f32 %v2371_v43, %v2071_v29  ;;  %v392_v60 = vmul.f32 %v2494_v25, %v2071_v29 }
  0x8b   : > { %v1213_v18 = vsel %vm1185_vm1, %v1148_v17, %v1164_v50  ;;  %v462_v12 = vmul.f32 %v2615_v40, %v2077_v31  ;;  %v463_v22 = vmul.f32 %v2617_v19, %v2077_v31  ;;  %v534_v62 = vmul.f32 %v2361_v37, %v2079_v32 }
  0x8c   : > { %v1197_v5 = vsel %vm1185_vm1, %v1164_v50, %v1180_v53  ;;  %v1240_v6 = vadd.f32 %v1213_v18, %v875_v23  ;;  %v423_v57 = vadd.f32 %v391_v15, %v352_v59  ;;  %v424_v9 = vadd.f32 %v392_v60, %v353_v21 }
  0x8d   : > { %v1241_v63 = vadd.f32 %v1197_v5, %v876_v0  ;;  %v535_v46 = vmul.f32 %v2363_v38, %v2079_v32  ;;  %v536_v49 = vmul.f32 %v2367_v41, %v2079_v32  ;;  %v586_v13 = vmul.f32 %v2371_v43, %v2081_v33 }
  0x8e   : > { %v494_v58 = vadd.f32 %v462_v12, %v423_v57  ;;  %v495_v51 = vadd.f32 %v463_v22, %v424_v9  ;;  %v587_v24 = vmul.f32 %v2494_v25, %v2081_v33  ;;  %v588_v36 = vmul.f32 %v2496_v54, %v2081_v33  ;;  %v1815_v22 = vld [vmem:[%s2020_s25 + $0xb0] sm:$0xff]  }
  0x8f   : > { %v1261_v11 = vpack.c.bf16 %v1241_v63, %v1240_v6  ;;  %v634_v39 = vadd.f32 %v586_v13, %v534_v62  ;;  %v686_v26 = vmul.f32 %v2615_v40, %v2120_v55  ;;  %v687_v2 = vmul.f32 %v2617_v19, %v2120_v55 }
  0x90   : > { %v635_v3 = vadd.f32 %v587_v24, %v535_v46  ;;  %v636_v44 = vadd.f32 %v588_v36, %v536_v49  ;;  %v688_v23 = vmul.f32 %v2621_v42, %v2120_v55  ;;  %v901_v30 = vmul.f32 %v2361_v37, %v2123_v56  ;;  %v1814_v37 = vld [vmem:[%s2020_s25 + $0xa8] sm:$0xff]  }
  0x91   : > { %1881 = vmatmul.mubr.bf16.gmra.mrb[4].mxu1 %v1261_v11  ;;  %v734_v0 = vadd.f32 %v686_v26, %v634_v39  ;;  %v902_v17 = vmul.f32 %v2363_v38, %v2123_v56  ;;  %v903_v50 = vmul.f32 %v2367_v41, %v2123_v56  ;;  %v953_v59 = vmul.f32 %v2371_v43, %v2127_v61 }
  0x92   : > { %v735_v53 = vadd.f32 %v687_v2, %v635_v3  ;;  %v736_v21 = vadd.f32 %v688_v23, %v636_v44  ;;  %v954_v15 = vmul.f32 %v2494_v25, %v2127_v61  ;;  %v955_v60 = vmul.f32 %v2496_v54, %v2127_v61 }
  0x93   : > { %v774_v18 = vrot.slane %v734_v0, 1  ;;  %v1001_v12 = vadd.f32 %v953_v59, %v901_v30  ;;  %v1053_v38 = vmul.f32 %v2615_v40, %v2159_v8  ;;  %v1054_v41 = vmul.f32 %v2617_v19, %v2159_v8 }
  0x94   : > { %v790_v62 = vrot.slane %v735_v53, 1  ;;  %v806_v5 = vrot.slane %v736_v21, 1  ;;  %v1002_v6 = vadd.f32 %v954_v15, %v902_v17  ;;  %v1003_v57 = vadd.f32 %v955_v60, %v903_v50 }
  0x95   : > { %v1055_v9 = vmul.f32 %v2621_v42, %v2159_v8  ;;  %v1101_v63 = vadd.f32 %v1053_v38, %v1001_v12  ;;  %v2681_v46 = vunpack.c.l.bf16 %v1814_v37  ;;  %v2683_v49 = vunpack.c.h.bf16 %v1814_v37 }
  0x96   : > { %v825_v13 = vsel %vm820_vm0, %v790_v62, %v806_v5  ;;  %v841_v24 = vsel %vm820_vm0, %v774_v18, %v790_v62  ;;  %v1102_v36 = vadd.f32 %v1054_v41, %v1002_v6  ;;  %v2689_v11 = vunpack.c.l.bf16 %v1815_v22 }
  0x97   : > { %v861_v39 = vadd.f32 %v841_v24, %v494_v58  ;;  %v862_v26 = vadd.f32 %v825_v13, %v495_v51  ;;  %v1103_v2 = vadd.f32 %v1055_v9, %v1003_v57  ;;  %v1141_v3 = vrot.slane %v1101_v63, 2 }
  0x98   : > { %v1157_v44 = vrot.slane %v1102_v36, 2  ;;  %v2691_v23 = vunpack.c.h.bf16 %v1815_v22  ;;  %v368_v30 = vmul.f32 %v2427_v10, %v2069_v28  ;;  %v369_v0 = vmul.f32 %v2429_v16, %v2069_v28 }
  0x99   : > { %v1173_v17 = vrot.slane %v1103_v2, 2  ;;  %v407_v50 = vmul.f32 %v2437_v20, %v2071_v29  ;;  %v408_v59 = vmul.f32 %v2553_v27, %v2071_v29  ;;  %v478_v58 = vmul.f32 %v2681_v46, %v2077_v31 }
  0x9a   : > { %v1206_v51 = vsel %vm1185_vm1, %v1141_v3, %v1157_v44  ;;  %v479_v53 = vmul.f32 %v2683_v49, %v2077_v31  ;;  %v558_v21 = vmul.f32 %v2427_v10, %v2079_v32  ;;  %v559_v15 = vmul.f32 %v2429_v16, %v2079_v32 }
  0x9b   : > { %v1190_v60 = vsel %vm1185_vm1, %v1157_v44, %v1173_v17  ;;  %v1226_v37 = vadd.f32 %v1206_v51, %v861_v39  ;;  %v439_v18 = vadd.f32 %v407_v50, %v368_v30  ;;  %v440_v12 = vadd.f32 %v408_v59, %v369_v0 }
  0x9c   : > { %v1227_v38 = vadd.f32 %v1190_v60, %v862_v26  ;;  %v560_v41 = vmul.f32 %v2435_v35, %v2079_v32  ;;  %v610_v22 = vmul.f32 %v2437_v20, %v2081_v33  ;;  %v611_v62 = vmul.f32 %v2553_v27, %v2081_v33 }
  0x9d   : > { %v510_v5 = vadd.f32 %v478_v58, %v439_v18  ;;  %v511_v6 = vadd.f32 %v479_v53, %v440_v12  ;;  %v612_v57 = vmul.f32 %v2555_v48, %v2081_v33  ;;  %v710_v9 = vmul.f32 %v2681_v46, %v2120_v55 }
  0x9e   : > { %v1254_v63 = vpack.c.bf16 %v1227_v38, %v1226_v37  ;;  %v658_v13 = vadd.f32 %v610_v22, %v558_v21  ;;  %v659_v24 = vadd.f32 %v611_v62, %v559_v15  ;;  %v711_v36 = vmul.f32 %v2683_v49, %v2120_v55 }
  0x9f   : > { %v660_v39 = vadd.f32 %v612_v57, %v560_v41  ;;  %v712_v26 = vmul.f32 %v2689_v11, %v2120_v55  ;;  %v925_v2 = vmul.f32 %v2427_v10, %v2123_v56  ;;  %v926_v3 = vmul.f32 %v2429_v16, %v2123_v56  ;;  %v1804_v16 = vld [vmem:[%s2020_s25 + $0x58] sm:$0xff]  }
  0xa0   : > { %1868 = vmatprep.mubr.bf16.mxu0 %v1254_v63  ;;  %v758_v44 = vadd.f32 %v710_v9, %v658_v13  ;;  %v759_v30 = vadd.f32 %v711_v36, %v659_v24  ;;  %v927_v0 = vmul.f32 %v2435_v35, %v2123_v56  ;;  %v977_v17 = vmul.f32 %v2437_v20, %v2127_v61 }
  0xa1   : > { %v760_v50 = vadd.f32 %v712_v26, %v660_v39  ;;  %v978_v59 = vmul.f32 %v2553_v27, %v2127_v61  ;;  %v979_v58 = vmul.f32 %v2555_v48, %v2127_v61  ;;  %v1077_v10 = vmul.f32 %v2681_v46, %v2159_v8 }
  0xa2   : > { %v782_v51 = vrot.slane %v758_v44, 1  ;;  %v798_v53 = vrot.slane %v759_v30, 1  ;;  %v1025_v21 = vadd.f32 %v977_v17, %v925_v2  ;;  %v1078_v35 = vmul.f32 %v2683_v49, %v2159_v8 }
  0xa3   : > { %v814_v15 = vrot.slane %v760_v50, 1  ;;  %v1026_v60 = vadd.f32 %v978_v59, %v926_v3  ;;  %v1027_v37 = vadd.f32 %v979_v58, %v927_v0  ;;  %v1079_v18 = vmul.f32 %v2689_v11, %v2159_v8 }
  0xa4   : > { %v849_v12 = vsel %vm820_vm0, %v782_v51, %v798_v53  ;;  %v1125_v38 = vadd.f32 %v1077_v10, %v1025_v21  ;;  %v2748_v41 = vunpack.c.l.bf16 %v1804_v16  ;;  %v2750_v22 = vunpack.c.h.bf16 %v1804_v16 }
  0xa5   : > { %v833_v62 = vsel %vm820_vm0, %v798_v53, %v814_v15  ;;  %v877_v57 = vadd.f32 %v849_v12, %v510_v5  ;;  %v1126_v9 = vadd.f32 %v1078_v35, %v1026_v60  ;;  %v1127_v63 = vadd.f32 %v1079_v18, %v1027_v37 }
  0xa6   : > { %v878_v13 = vadd.f32 %v833_v62, %v511_v6  ;;  %v1149_v24 = vrot.slane %v1125_v38, 2  ;;  %v354_v36 = vmul.f32 %v2371_v43, %v2069_v28  ;;  %v355_v39 = vmul.f32 %v2494_v25, %v2069_v28 }
  0xa7   : > { %v1165_v26 = vrot.slane %v1126_v9, 2  ;;  %v1181_v2 = vrot.slane %v1127_v63, 2  ;;  %v393_v3 = vmul.f32 %v2615_v40, %v2071_v29  ;;  %v394_v44 = vmul.f32 %v2617_v19, %v2071_v29 }
  0xa8   : > { %v464_v5 = vmul.f32 %v2625_v45, %v2077_v31  ;;  %v465_v6 = vmul.f32 %v2748_v41, %v2077_v31  ;;  %v537_v30 = vmul.f32 %v2371_v43, %v2079_v32  ;;  %v538_v0 = vmul.f32 %v2494_v25, %v2079_v32 }
  0xa9   : > { %v1198_v17 = vsel %vm1185_vm1, %v1165_v26, %v1181_v2  ;;  %v1214_v50 = vsel %vm1185_vm1, %v1149_v24, %v1165_v26  ;;  %v425_v59 = vadd.f32 %v393_v3, %v354_v36  ;;  %v426_v58 = vadd.f32 %v394_v44, %v355_v39 }
  0xaa   : > { %v1242_v10 = vadd.f32 %v1214_v50, %v877_v57  ;;  %v1243_v16 = vadd.f32 %v1198_v17, %v878_v13  ;;  %v539_v51 = vmul.f32 %v2496_v54, %v2079_v32  ;;  %v589_v53 = vmul.f32 %v2615_v40, %v2081_v33 }
  0xab   : > { %v496_v21 = vadd.f32 %v464_v5, %v425_v59  ;;  %v497_v35 = vadd.f32 %v465_v6, %v426_v58  ;;  %v590_v15 = vmul.f32 %v2617_v19, %v2081_v33  ;;  %v591_v60 = vmul.f32 %v2621_v42, %v2081_v33 }
  0xac   : > { %v1262_v37 = vpack.c.bf16 %v1243_v16, %v1242_v10  ;;  %v637_v18 = vadd.f32 %v589_v53, %v537_v30  ;;  %v689_v12 = vmul.f32 %v2625_v45, %v2120_v55  ;;  %v690_v38 = vmul.f32 %v2748_v41, %v2120_v55 }
  0xad   : > { %v638_v62 = vadd.f32 %v590_v15, %v538_v0  ;;  %v639_v57 = vadd.f32 %v591_v60, %v539_v51  ;;  %v691_v9 = vmul.f32 %v2750_v22, %v2120_v55  ;;  %v904_v63 = vmul.f32 %v2371_v43, %v2123_v56  ;;  %v1816_v43 = vld [vmem:[%s2020_s25 + $0xb8] sm:$0xff]  }
  0xae   : > { %1884 = vmatprep.mubr.bf16.mxu1 %v1262_v37  ;;  %v737_v13 = vadd.f32 %v689_v12, %v637_v18  ;;  %v905_v24 = vmul.f32 %v2494_v25, %v2123_v56  ;;  %v906_v36 = vmul.f32 %v2496_v54, %v2123_v56  ;;  %v956_v39 = vmul.f32 %v2615_v40, %v2127_v61 }
  0xaf   : > { %v738_v26 = vadd.f32 %v690_v38, %v638_v62  ;;  %v739_v2 = vadd.f32 %v691_v9, %v639_v57  ;;  %v957_v3 = vmul.f32 %v2617_v19, %v2127_v61  ;;  %v958_v44 = vmul.f32 %v2621_v42, %v2127_v61 }
  0xb0   : > { %v775_v5 = vrot.slane %v737_v13, 1  ;;  %v1004_v6 = vadd.f32 %v956_v39, %v904_v63  ;;  %v1056_v25 = vmul.f32 %v2625_v45, %v2159_v8  ;;  %v1057_v54 = vmul.f32 %v2748_v41, %v2159_v8 }
  0xb1   : > { %v791_v30 = vrot.slane %v738_v26, 1  ;;  %v807_v0 = vrot.slane %v739_v2, 1  ;;  %v1005_v17 = vadd.f32 %v957_v3, %v905_v24  ;;  %v1006_v50 = vadd.f32 %v958_v44, %v906_v36 }
  0xb2   : > { %v1058_v59 = vmul.f32 %v2750_v22, %v2159_v8  ;;  %v1104_v58 = vadd.f32 %v1056_v25, %v1004_v6  ;;  %v2807_v10 = vunpack.c.l.bf16 %v1816_v43  ;;  %v2809_v16 = vunpack.c.h.bf16 %v1816_v43 }
  0xb3   : > { %v826_v51 = vsel %vm820_vm0, %v791_v30, %v807_v0  ;;  %v842_v53 = vsel %vm820_vm0, %v775_v5, %v791_v30  ;;  %v1105_v15 = vadd.f32 %v1057_v54, %v1005_v17  ;;  %v370_v60 = vmul.f32 %v2437_v20, %v2069_v28 }
  0xb4   : > { %v863_v37 = vadd.f32 %v842_v53, %v496_v21  ;;  %v864_v18 = vadd.f32 %v826_v51, %v497_v35  ;;  %v1106_v12 = vadd.f32 %v1058_v59, %v1006_v50  ;;  %v1142_v38 = vrot.slane %v1104_v58, 2 }
  0xb5   : > { %v1158_v62 = vrot.slane %v1105_v15, 2  ;;  %v371_v57 = vmul.f32 %v2553_v27, %v2069_v28  ;;  %v409_v9 = vmul.f32 %v2681_v46, %v2071_v29  ;;  %v410_v63 = vmul.f32 %v2683_v49, %v2071_v29 }
  0xb6   : > { %v1174_v13 = vrot.slane %v1106_v12, 2  ;;  %v480_v24 = vmul.f32 %v2691_v23, %v2077_v31  ;;  %v481_v21 = vmul.f32 %v2807_v10, %v2077_v31  ;;  %v561_v35 = vmul.f32 %v2437_v20, %v2079_v32 }
  0xb7   : > { %v1207_v36 = vsel %vm1185_vm1, %v1142_v38, %v1158_v62  ;;  %v441_v39 = vadd.f32 %v409_v9, %v370_v60  ;;  %v442_v26 = vadd.f32 %v410_v63, %v371_v57  ;;  %v562_v2 = vmul.f32 %v2553_v27, %v2079_v32 }
  0xb8   : > { %v1191_v3 = vsel %vm1185_vm1, %v1158_v62, %v1174_v13  ;;  %v1228_v44 = vadd.f32 %v1207_v36, %v863_v37  ;;  %v563_v43 = vmul.f32 %v2555_v48, %v2079_v32  ;;  %v613_v5 = vmul.f32 %v2681_v46, %v2081_v33 }
  0xb9   : > { %v1229_v6 = vadd.f32 %v1191_v3, %v864_v18  ;;  %v512_v25 = vadd.f32 %v480_v24, %v441_v39  ;;  %v513_v54 = vadd.f32 %v481_v21, %v442_v26  ;;  %v614_v30 = vmul.f32 %v2683_v49, %v2081_v33 }
  0xba   : > { %v615_v0 = vmul.f32 %v2689_v11, %v2081_v33  ;;  %v661_v17 = vadd.f32 %v613_v5, %v561_v35  ;;  %v713_v50 = vmul.f32 %v2691_v23, %v2120_v55  ;;  %v714_v59 = vmul.f32 %v2807_v10, %v2120_v55 }
  0xbb   : > { %v1255_v58 = vpack.c.bf16 %v1229_v6, %v1228_v44  ;;  %v662_v51 = vadd.f32 %v614_v30, %v562_v2  ;;  %v715_v53 = vmul.f32 %v2809_v16, %v2120_v55  ;;  %v928_v15 = vmul.f32 %v2437_v20, %v2123_v56 }
  0xbc   : > { %v663_v60 = vadd.f32 %v615_v0, %v563_v43  ;;  %v761_v37 = vadd.f32 %v713_v50, %v661_v17  ;;  %v929_v18 = vmul.f32 %v2553_v27, %v2123_v56  ;;  %v930_v12 = vmul.f32 %v2555_v48, %v2123_v56 }
  0xbd   : > { %1869 = vmatmul.mubr.bf16.gmra.mrb[8].mxu0 %v1255_v58  ;;  %v762_v38 = vadd.f32 %v714_v59, %v662_v51  ;;  %v980_v62 = vmul.f32 %v2681_v46, %v2127_v61  ;;  %v981_v57 = vmul.f32 %v2683_v49, %v2127_v61  ;;  %v982_v9 = vmul.f32 %v2689_v11, %v2127_v61 }
  0xbe   : > { %v763_v20 = vadd.f32 %v715_v53, %v663_v60  ;;  %v783_v63 = vrot.slane %v761_v37, 1  ;;  %v1080_v13 = vmul.f32 %v2691_v23, %v2159_v8  ;;  %v1081_v27 = vmul.f32 %v2807_v10, %v2159_v8 }
  0xbf   : > { %v799_v48 = vrot.slane %v762_v38, 1  ;;  %v1028_v24 = vadd.f32 %v980_v62, %v928_v15  ;;  %v1029_v21 = vadd.f32 %v981_v57, %v929_v18  ;;  %v1030_v35 = vadd.f32 %v982_v9, %v930_v12 }
  0xc0   : > { %v815_v36 = vrot.slane %v763_v20, 1  ;;  %v1082_v39 = vmul.f32 %v2809_v16, %v2159_v8  ;;  %v356_v26 = vmul.f32 %v2615_v40, %v2069_v28  ;;  %v357_v2 = vmul.f32 %v2617_v19, %v2069_v28 }
  0xc1   : > { %v850_v3 = vsel %vm820_vm0, %v783_v63, %v799_v48  ;;  %v1128_v44 = vadd.f32 %v1080_v13, %v1028_v24  ;;  %v1129_v43 = vadd.f32 %v1081_v27, %v1029_v21  ;;  %v395_v5 = vmul.f32 %v2625_v45, %v2071_v29 }
  0xc2   : > { %v834_v6 = vsel %vm820_vm0, %v799_v48, %v815_v36  ;;  %v879_v30 = vadd.f32 %v850_v3, %v512_v25  ;;  %v1130_v0 = vadd.f32 %v1082_v39, %v1030_v35  ;;  %v396_v17 = vmul.f32 %v2748_v41, %v2071_v29 }
  0xc3   : > { %v880_v50 = vadd.f32 %v834_v6, %v513_v54  ;;  %v1150_v59 = vrot.slane %v1128_v44, 2  ;;  %v1166_v58 = vrot.slane %v1129_v43, 2  ;;  %v427_v51 = vadd.f32 %v395_v5, %v356_v26 }
  0xc4   : > { %v1182_v53 = vrot.slane %v1130_v0, 2  ;;  %v428_v15 = vadd.f32 %v396_v17, %v357_v2  ;;  %v466_v60 = vmul.f32 %v2083_v34, %v2077_v31  ;;  %v467_v37 = vmul.f32 %v2106_v47, %v2077_v31  ;;  %v1817_v17 = vld [vmem:[%s2020_s25 + $0xc0] sm:$0xff]  }
  0xc5   : > { %v1215_v18 = vsel %vm1185_vm1, %v1150_v59, %v1166_v58  ;;  %v540_v25 = vmul.f32 %v2615_v40, %v2079_v32  ;;  %v541_v54 = vmul.f32 %v2617_v19, %v2079_v32  ;;  %v542_v12 = vmul.f32 %v2621_v42, %v2079_v32 }
  0xc6   : > { %v1199_v38 = vsel %vm1185_vm1, %v1166_v58, %v1182_v53  ;;  %v1244_v62 = vadd.f32 %v1215_v18, %v879_v30  ;;  %v498_v57 = vadd.f32 %v466_v60, %v427_v51  ;;  %v499_v9 = vadd.f32 %v467_v37, %v428_v15  ;;  %v2923_v58 = vld [vmem:[%s2020_s25 + $0xc8] sm:$0xff]  }
  0xc7   : > { %v1245_v20 = vadd.f32 %v1199_v38, %v880_v50  ;;  %v592_v63 = vmul.f32 %v2625_v45, %v2081_v33  ;;  %v593_v13 = vmul.f32 %v2748_v41, %v2081_v33  ;;  %v594_v27 = vmul.f32 %v2750_v22, %v2081_v33 }
  0xc8   : > { %v692_v48 = vmul.f32 %v2083_v34, %v2120_v55  ;;  %v693_v24 = vmul.f32 %v2106_v47, %v2120_v55  ;;  %v694_v21 = vmul.f32 %v2117_v52, %v2120_v55  ;;  %v907_v35 = vmul.f32 %v2615_v40, %v2123_v56 }
  0xc9   : > { %v1263_v36 = vpack.c.bf16 %v1245_v20, %v1244_v62  ;;  %v640_v39 = vadd.f32 %v592_v63, %v540_v25  ;;  %v641_v26 = vadd.f32 %v593_v13, %v541_v54  ;;  %v642_v2 = vadd.f32 %v594_v27, %v542_v12 }
  0xca   : > { %v908_v3 = vmul.f32 %v2617_v19, %v2123_v56  ;;  %v909_v44 = vmul.f32 %v2621_v42, %v2123_v56  ;;  %v959_v43 = vmul.f32 %v2625_v45, %v2127_v61  ;;  %v960_v5 = vmul.f32 %v2748_v41, %v2127_v61 }
  0xcb   : > { %1885 = vmatmul.mubr.bf16.gmra.mrb[8].mxu1 %v1263_v36  ;;  %v740_v6 = vadd.f32 %v692_v48, %v640_v39  ;;  %v741_v40 = vadd.f32 %v693_v24, %v641_v26  ;;  %v742_v30 = vadd.f32 %v694_v21, %v642_v2  ;;  %v961_v0 = vmul.f32 %v2750_v22, %v2127_v61 }
  0xcc   : > { %v1007_v50 = vadd.f32 %v959_v43, %v907_v35  ;;  %v1008_v59 = vadd.f32 %v960_v5, %v908_v3  ;;  %v1059_v19 = vmul.f32 %v2083_v34, %v2159_v8  ;;  %v1060_v42 = vmul.f32 %v2106_v47, %v2159_v8 }
  0xcd   : > { %v776_v51 = vrot.slane %v740_v6, 1  ;;  %v792_v53 = vrot.slane %v741_v40, 1  ;;  %v808_v15 = vrot.slane %v742_v30, 1  ;;  %v1009_v60 = vadd.f32 %v961_v0, %v909_v44 }
  0xce   : > { %v1061_v37 = vmul.f32 %v2117_v52, %v2159_v8  ;;  %v1107_v18 = vadd.f32 %v1059_v19, %v1007_v50  ;;  %v1108_v25 = vadd.f32 %v1060_v42, %v1008_v59  ;;  %v2927_v54 = vunpack.c.l.bf16 %v1817_v17 }
  0xcf   : > { %v827_v12 = vsel %vm820_vm0, %v792_v53, %v808_v15  ;;  %v843_v38 = vsel %vm820_vm0, %v776_v51, %v792_v53  ;;  %v2933_v62 = vunpack.c.h.bf16 %v1817_v17  ;;  %v2936_v20 = vunpack.c.l.bf16 %v2923_v58 }
  0xd0   : > { %v865_v63 = vadd.f32 %v843_v38, %v498_v57  ;;  %v866_v13 = vadd.f32 %v827_v12, %v499_v9  ;;  %v1109_v27 = vadd.f32 %v1061_v37, %v1009_v60  ;;  %v1143_v48 = vrot.slane %v1107_v18, 2 }
  0xd1   : > { %v1159_v24 = vrot.slane %v1108_v25, 2  ;;  %v372_v21 = vmul.f32 %v2681_v46, %v2069_v28  ;;  %v373_v35 = vmul.f32 %v2683_v49, %v2069_v28  ;;  %v411_v36 = vmul.f32 %v2691_v23, %v2071_v29 }
  0xd2   : > { %v1175_v39 = vrot.slane %v1109_v27, 2  ;;  %v412_v26 = vmul.f32 %v2807_v10, %v2071_v29  ;;  %v482_v57 = vmul.f32 %v2927_v54, %v2077_v31  ;;  %v483_v9 = vmul.f32 %v2933_v62, %v2077_v31 }
  0xd3   : > { %v1208_v2 = vsel %vm1185_vm1, %v1143_v48, %v1159_v24  ;;  %v443_v3 = vadd.f32 %v411_v36, %v372_v21  ;;  %v564_v44 = vmul.f32 %v2681_v46, %v2079_v32  ;;  %v565_v43 = vmul.f32 %v2683_v49, %v2079_v32 }
  0xd4   : > { %v1192_v5 = vsel %vm1185_vm1, %v1159_v24, %v1175_v39  ;;  %v1230_v6 = vadd.f32 %v1208_v2, %v865_v63  ;;  %v444_v40 = vadd.f32 %v412_v26, %v373_v35  ;;  %v566_v30 = vmul.f32 %v2689_v11, %v2079_v32 }
  0xd5   : > { %v1231_v0 = vadd.f32 %v1192_v5, %v866_v13  ;;  %v514_v17 = vadd.f32 %v482_v57, %v443_v3  ;;  %v616_v50 = vmul.f32 %v2691_v23, %v2081_v33  ;;  %v617_v59 = vmul.f32 %v2807_v10, %v2081_v33 }
  0xd6   : > { %v515_v19 = vadd.f32 %v483_v9, %v444_v40  ;;  %v618_v42 = vmul.f32 %v2809_v16, %v2081_v33  ;;  %v716_v51 = vmul.f32 %v2927_v54, %v2120_v55  ;;  %v717_v53 = vmul.f32 %v2933_v62, %v2120_v55 }
  0xd7   : > { %v1256_v15 = vpack.c.bf16 %v1231_v0, %v1230_v6  ;;  %v664_v60 = vadd.f32 %v616_v50, %v564_v44  ;;  %v665_v37 = vadd.f32 %v617_v59, %v565_v43  ;;  %v718_v18 = vmul.f32 %v2936_v20, %v2120_v55 }
  0xd8   : > { %v666_v25 = vadd.f32 %v618_v42, %v566_v30  ;;  %v931_v12 = vmul.f32 %v2681_v46, %v2123_v56  ;;  %v932_v38 = vmul.f32 %v2683_v49, %v2123_v56  ;;  %v933_v63 = vmul.f32 %v2689_v11, %v2123_v56 }
  0xd9   : > { %1872 = vmatprep.mubr.bf16.mxu0 %v1256_v15  ;;  %v764_v13 = vadd.f32 %v716_v51, %v664_v60  ;;  %v765_v27 = vadd.f32 %v717_v53, %v665_v37  ;;  %v983_v48 = vmul.f32 %v2691_v23, %v2127_v61  ;;  %v984_v24 = vmul.f32 %v2807_v10, %v2127_v61 }
  0xda   : > { %v766_v21 = vadd.f32 %v718_v18, %v666_v25  ;;  %v985_v35 = vmul.f32 %v2809_v16, %v2127_v61  ;;  %v1083_v46 = vmul.f32 %v2927_v54, %v2159_v8  ;;  %v1084_v49 = vmul.f32 %v2933_v62, %v2159_v8 }
  0xdb   : > { %v784_v11 = vrot.slane %v764_v13, 1  ;;  %v800_v36 = vrot.slane %v765_v27, 1  ;;  %v1031_v39 = vadd.f32 %v983_v48, %v931_v12  ;;  %v1032_v26 = vadd.f32 %v984_v24, %v932_v38 }
  0xdc   : > { %v816_v57 = vrot.slane %v766_v21, 1  ;;  %v1033_v9 = vadd.f32 %v985_v35, %v933_v63  ;;  %v1085_v2 = vmul.f32 %v2936_v20, %v2159_v8  ;;  %v358_v3 = vmul.f32 %v2625_v45, %v2069_v28 }
  0xdd   : > { %v851_v44 = vsel %vm820_vm0, %v784_v11, %v800_v36  ;;  %v1131_v43 = vadd.f32 %v1083_v46, %v1031_v39  ;;  %v1132_v5 = vadd.f32 %v1084_v49, %v1032_v26  ;;  %v359_v6 = vmul.f32 %v2748_v41, %v2069_v28 }
  0xde   : > { %v835_v40 = vsel %vm820_vm0, %v800_v36, %v816_v57  ;;  %v881_v30 = vadd.f32 %v851_v44, %v514_v17  ;;  %v1133_v0 = vadd.f32 %v1085_v2, %v1033_v9  ;;  %v397_v50 = vmul.f32 %v2083_v34, %v2071_v29 }
  0xdf   : > { %v882_v59 = vadd.f32 %v835_v40, %v515_v19  ;;  %v1151_v42 = vrot.slane %v1131_v43, 2  ;;  %v1167_v51 = vrot.slane %v1132_v5, 2  ;;  %v398_v53 = vmul.f32 %v2106_v47, %v2071_v29 }
  0xe0   : > { %v1183_v15 = vrot.slane %v1133_v0, 2  ;;  %v429_v60 = vadd.f32 %v397_v50, %v358_v3  ;;  %v468_v37 = vmul.f32 %v2135_v1, %v2077_v31  ;;  %v469_v18 = vmul.f32 %v2148_v7, %v2077_v31  ;;  %v3045_v50 = vld [vmem:[%s2020_s25 + $0xd0] sm:$0xff]  }
  0xe1   : > { %v1216_v17 = vsel %vm1185_vm1, %v1151_v42, %v1167_v51  ;;  %v430_v25 = vadd.f32 %v398_v53, %v359_v6  ;;  %v543_v19 = vmul.f32 %v2625_v45, %v2079_v32  ;;  %v544_v12 = vmul.f32 %v2748_v41, %v2079_v32 }
  0xe2   : > { %v1200_v38 = vsel %vm1185_vm1, %v1167_v51, %v1183_v15  ;;  %v1246_v63 = vadd.f32 %v1216_v17, %v881_v30  ;;  %v500_v13 = vadd.f32 %v468_v37, %v429_v60  ;;  %v545_v27 = vmul.f32 %v2750_v22, %v2079_v32 }
  0xe3   : > { %v1247_v48 = vadd.f32 %v1200_v38, %v882_v59  ;;  %v501_v24 = vadd.f32 %v469_v18, %v430_v25  ;;  %v595_v21 = vmul.f32 %v2083_v34, %v2081_v33  ;;  %v596_v35 = vmul.f32 %v2106_v47, %v2081_v33 }
  0xe4   : > { %v597_v46 = vmul.f32 %v2117_v52, %v2081_v33  ;;  %v695_v49 = vmul.f32 %v2135_v1, %v2120_v55  ;;  %v696_v11 = vmul.f32 %v2148_v7, %v2120_v55  ;;  %v697_v36 = vmul.f32 %v2161_v14, %v2120_v55 }
  0xe5   : > { %v1264_v39 = vpack.c.bf16 %v1247_v48, %v1246_v63  ;;  %v643_v26 = vadd.f32 %v595_v21, %v543_v19  ;;  %v644_v57 = vadd.f32 %v596_v35, %v544_v12  ;;  %v910_v9 = vmul.f32 %v2625_v45, %v2123_v56 }
  0xe6   : > { %v645_v2 = vadd.f32 %v597_v46, %v545_v27  ;;  %v911_v3 = vmul.f32 %v2748_v41, %v2123_v56  ;;  %v912_v44 = vmul.f32 %v2750_v22, %v2123_v56  ;;  %v962_v43 = vmul.f32 %v2083_v34, %v2127_v61 }
  0xe7   : > { %1888 = vmatprep.mubr.bf16.mxu1 %v1264_v39  ;;  %v743_v5 = vadd.f32 %v695_v49, %v643_v26  ;;  %v744_v6 = vadd.f32 %v696_v11, %v644_v57  ;;  %v963_v40 = vmul.f32 %v2106_v47, %v2127_v61  ;;  %v964_v30 = vmul.f32 %v2117_v52, %v2127_v61 }
  0xe8   : > { %v745_v45 = vadd.f32 %v697_v36, %v645_v2  ;;  %v1010_v0 = vadd.f32 %v962_v43, %v910_v9  ;;  %v1062_v41 = vmul.f32 %v2135_v1, %v2159_v8  ;;  %v1063_v22 = vmul.f32 %v2148_v7, %v2159_v8 }
  0xe9   : > { %v777_v34 = vrot.slane %v743_v5, 1  ;;  %v793_v59 = vrot.slane %v744_v6, 1  ;;  %v1011_v42 = vadd.f32 %v963_v40, %v911_v3  ;;  %v1012_v51 = vadd.f32 %v964_v30, %v912_v44 }
  0xea   : > { %v809_v53 = vrot.slane %v745_v45, 1  ;;  %v1064_v47 = vmul.f32 %v2161_v14, %v2159_v8  ;;  %v1110_v15 = vadd.f32 %v1062_v41, %v1010_v0  ;;  %v1789_v52 = vunpack.c.h.bf16 %v2923_v58 }
  0xeb   : > { %v844_v60 = vsel %vm820_vm0, %v777_v34, %v793_v59  ;;  %v1111_v1 = vadd.f32 %v1063_v22, %v1011_v42  ;;  %v1792_v37 = vunpack.c.l.bf16 %v3045_v50  ;;  %v1793_v7 = vunpack.c.h.bf16 %v3045_v50 }
  0xec   : > { %v828_v18 = vsel %vm820_vm0, %v793_v59, %v809_v53  ;;  %v867_v17 = vadd.f32 %v844_v60, %v500_v13  ;;  %v1112_v25 = vadd.f32 %v1064_v47, %v1012_v51  ;;  %v1144_v19 = vrot.slane %v1110_v15, 2 }
  0xed   : > { %v868_v12 = vadd.f32 %v828_v18, %v501_v24  ;;  %v1160_v38 = vrot.slane %v1111_v1, 2  ;;  %v374_v14 = vmul.f32 %v2691_v23, %v2069_v28  ;;  %v375_v58 = vmul.f32 %v2807_v10, %v2069_v28 }
  0xee   : > { %v1176_v63 = vrot.slane %v1112_v25, 2  ;;  %v413_v27 = vmul.f32 %v2927_v54, %v2071_v29  ;;  %v414_v48 = vmul.f32 %v2933_v62, %v2071_v29  ;;  %v484_v21 = vmul.f32 %v1789_v52, %v2077_v31 }
  0xef   : > { %v1209_v13 = vsel %vm1185_vm1, %v1144_v19, %v1160_v38  ;;  %v485_v24 = vmul.f32 %v1792_v37, %v2077_v31  ;;  %v567_v35 = vmul.f32 %v2691_v23, %v2079_v32  ;;  %v568_v28 = vmul.f32 %v2807_v10, %v2079_v32 }
  0xf0   : > { %v1193_v46 = vsel %vm1185_vm1, %v1160_v38, %v1176_v63  ;;  %v1232_v49 = vadd.f32 %v1209_v13, %v867_v17  ;;  %v445_v11 = vadd.f32 %v413_v27, %v374_v14  ;;  %v446_v36 = vadd.f32 %v414_v48, %v375_v58 }
  0xf1   : > { %v1233_v29 = vadd.f32 %v1193_v46, %v868_v12  ;;  %v569_v39 = vmul.f32 %v2809_v16, %v2079_v32  ;;  %v619_v26 = vmul.f32 %v2927_v54, %v2081_v33  ;;  %v620_v31 = vmul.f32 %v2933_v62, %v2081_v33 }
  0xf2   : > { %v516_v57 = vadd.f32 %v484_v21, %v445_v11  ;;  %v517_v9 = vadd.f32 %v485_v24, %v446_v36  ;;  %v621_v2 = vmul.f32 %v2936_v20, %v2081_v33  ;;  %v719_v3 = vmul.f32 %v1789_v52, %v2120_v55 }
  0xf3   : > { %v1257_v44 = vpack.c.bf16 %v1233_v29, %v1232_v49  ;;  %v667_v43 = vadd.f32 %v619_v26, %v567_v35  ;;  %v668_v5 = vadd.f32 %v620_v31, %v568_v28  ;;  %v720_v6 = vmul.f32 %v1792_v37, %v2120_v55 }
  0xf4   : > { %v669_v40 = vadd.f32 %v621_v2, %v569_v39  ;;  %v721_v32 = vmul.f32 %v1793_v7, %v2120_v55  ;;  %v934_v30 = vmul.f32 %v2691_v23, %v2123_v56  ;;  %v935_v45 = vmul.f32 %v2807_v10, %v2123_v56 }
  0xf5   : > { %1873 = vmatmul.mubr.bf16.gmra.mrb[12].mxu0 %v1257_v44  ;;  %v767_v0 = vadd.f32 %v719_v3, %v667_v43  ;;  %v768_v41 = vadd.f32 %v720_v6, %v668_v5  ;;  %v936_v33 = vmul.f32 %v2809_v16, %v2123_v56  ;;  %v986_v22 = vmul.f32 %v2927_v54, %v2127_v61 }
  0xf6   : > { %v769_v50 = vadd.f32 %v721_v32, %v669_v40  ;;  %v987_v34 = vmul.f32 %v2933_v62, %v2127_v61  ;;  %v988_v55 = vmul.f32 %v2936_v20, %v2127_v61  ;;  %v1086_v23 = vmul.f32 %v1789_v52, %v2159_v8 }
  0xf7   : > { %v785_v59 = vrot.slane %v767_v0, 1  ;;  %v801_v10 = vrot.slane %v768_v41, 1  ;;  %v1034_v42 = vadd.f32 %v986_v22, %v934_v30  ;;  %v1087_v51 = vmul.f32 %v1792_v37, %v2159_v8 }
  0xf8   : > { %v817_v53 = vrot.slane %v769_v50, 1  ;;  %v1035_v47 = vadd.f32 %v987_v34, %v935_v45  ;;  %v1036_v56 = vadd.f32 %v988_v55, %v936_v33  ;;  %v1088_v16 = vmul.f32 %v1793_v7, %v2159_v8 }
  0xf9   : > { %v852_v54 = vsel %vm820_vm0, %v785_v59, %v801_v10  ;;  %v1134_v62 = vadd.f32 %v1086_v23, %v1034_v42 }
  0xfa   : > { %v836_v61 = vsel %vm820_vm0, %v801_v10, %v817_v53  ;;  %v1135_v20 = vadd.f32 %v1087_v51, %v1035_v47  ;;  %v1136_v15 = vadd.f32 %v1088_v16, %v1036_v56  ;;  %v883_v52 = vadd.f32 %v852_v54, %v516_v57 }
  0xfb   : > { %v884_v60 = vadd.f32 %v836_v61, %v517_v9  ;;  %v1152_v1 = vrot.slane %v1134_v62, 2 }
  0xfc   : > { %v1168_v18 = vrot.slane %v1135_v20, 2  ;;  %v1184_v37 = vrot.slane %v1136_v15, 2 }
  0xfe   : > { %v1201_v17 = vsel %vm1185_vm1, %v1168_v18, %v1184_v37  ;;  %v1217_v8 = vsel %vm1185_vm1, %v1152_v1, %v1168_v18 }
  0xff   : > { %v1248_v7 = vadd.f32 %v1217_v8, %v883_v52  ;;  %v1249_v25 = vadd.f32 %v1201_v17, %v884_v60 }
 0x101   : > { %v1265_v19 = vpack.c.bf16 %v1249_v25, %v1248_v7 }
 0x103   : > { %1889 = vmatmul.mubr.bf16.gmra.mrb[12].mxu1 %v1265_v19 }
 0x11c   : > { %v1862_v4 = vpop.f32.mrb[0].mxu0 }
 0x11d   : > { %1525 = vst [vmem:[%s3112_s22 + $0x10] sm:$0xff] %v1862_v4  ;;  %v1396_v12 = vpop.f32.mrb[1].mxu0 }
 0x11e   : > { %1523 = vst [vmem:[%s3112_s22] sm:$0xff] %v1396_v12  ;;  %v1863_v38 = vpop.f32.mrb[2].mxu0 }
 0x11f   : > { %1526 = vst [vmem:[%s3112_s22 + $0x18] sm:$0xff] %v1863_v38  ;;  %v1399_v14 = vpop.f32.mrb[3].mxu0 }
 0x120   : > { %1524 = vst [vmem:[%s3112_s22 + $0x8] sm:$0xff] %v1399_v14 }
 0x12a   : > { %v1878_v58 = vpop.f32.mrb[0].mxu1 }
 0x12b   : > { %1541 = vst [vmem:[%s3112_s22 + $0x90] sm:$0xff] %v1878_v58  ;;  %v1460_v63 = vpop.f32.mrb[1].mxu1 }
 0x12c   : > { %1539 = vst [vmem:[%s3112_s22 + $0x80] sm:$0xff] %v1460_v63  ;;  %v1879_v27 = vpop.f32.mrb[2].mxu1 }
 0x12d   : > { %1542 = vst [vmem:[%s3112_s22 + $0x98] sm:$0xff] %v1879_v27  ;;  %v1463_v48 = vpop.f32.mrb[3].mxu1 }
 0x12e   : > { %1540 = vst [vmem:[%s3112_s22 + $0x88] sm:$0xff] %v1463_v48 }
 0x156   : > { %v1866_v21 = vpop.f32.mrb[4].mxu0 }
 0x157   : > { %1529 = vst [vmem:[%s3112_s22 + $0x30] sm:$0xff] %v1866_v21  ;;  %v1412_v13 = vpop.f32.mrb[5].mxu0 }
 0x158   : > { %1527 = vst [vmem:[%s3112_s22 + $0x20] sm:$0xff] %v1412_v13  ;;  %v1867_v24 = vpop.f32.mrb[6].mxu0 }
 0x159   : > { %1530 = vst [vmem:[%s3112_s22 + $0x38] sm:$0xff] %v1867_v24  ;;  %v1415_v35 = vpop.f32.mrb[7].mxu0 }
 0x15a   : > { %1528 = vst [vmem:[%s3112_s22 + $0x28] sm:$0xff] %v1415_v35 }
 0x164   : > { %v1882_v28 = vpop.f32.mrb[4].mxu1 }
 0x165   : > { %1545 = vst [vmem:[%s3112_s22 + $0xb0] sm:$0xff] %v1882_v28  ;;  %v1476_v46 = vpop.f32.mrb[5].mxu1 }
 0x166   : > { %1543 = vst [vmem:[%s3112_s22 + $0xa0] sm:$0xff] %v1476_v46  ;;  %v1883_v49 = vpop.f32.mrb[6].mxu1 }
 0x167   : > { %1546 = vst [vmem:[%s3112_s22 + $0xb8] sm:$0xff] %v1883_v49  ;;  %v1479_v11 = vpop.f32.mrb[7].mxu1 }
 0x168   : > { %1544 = vst [vmem:[%s3112_s22 + $0xa8] sm:$0xff] %v1479_v11 }
 0x190   : > { %v1870_v36 = vpop.f32.mrb[8].mxu0 }
 0x191   : > { %1533 = vst [vmem:[%s3112_s22 + $0x50] sm:$0xff] %v1870_v36  ;;  %v1428_v29 = vpop.f32.mrb[9].mxu0 }
 0x192   : > { %1531 = vst [vmem:[%s3112_s22 + $0x40] sm:$0xff] %v1428_v29  ;;  %v1871_v39 = vpop.f32.mrb[10].mxu0 }
 0x193   : > { %1534 = vst [vmem:[%s3112_s22 + $0x58] sm:$0xff] %v1871_v39  ;;  %v1431_v26 = vpop.f32.mrb[11].mxu0 }
 0x194   : > { %1532 = vst [vmem:[%s3112_s22 + $0x48] sm:$0xff] %v1431_v26 }
 0x19e   : > { %v1886_v31 = vpop.f32.mrb[8].mxu1 }
 0x19f   : > { %1549 = vst [vmem:[%s3112_s22 + $0xd0] sm:$0xff] %v1886_v31  ;;  %v1492_v57 = vpop.f32.mrb[9].mxu1 }
 0x1a0   : > { %1547 = vst [vmem:[%s3112_s22 + $0xc0] sm:$0xff] %v1492_v57  ;;  %v1887_v9 = vpop.f32.mrb[10].mxu1 }
 0x1a1   : > { %1550 = vst [vmem:[%s3112_s22 + $0xd8] sm:$0xff] %v1887_v9  ;;  %v1495_v2 = vpop.f32.mrb[11].mxu1 }
 0x1a2   : > { %1548 = vst [vmem:[%s3112_s22 + $0xc8] sm:$0xff] %v1495_v2 }
 0x1c8   : > { %v1874_v3 = vpop.f32.mrb[12].mxu0 }
 0x1c9   : > { %1537 = vst [vmem:[%s3112_s22 + $0x70] sm:$0xff] %v1874_v3  ;;  %v1444_v44 = vpop.f32.mrb[13].mxu0 }
 0x1ca   : > { %1535 = vst [vmem:[%s3112_s22 + $0x60] sm:$0xff] %v1444_v44  ;;  %v1875_v43 = vpop.f32.mrb[14].mxu0 }
 0x1cb   : > { %1538 = vst [vmem:[%s3112_s22 + $0x78] sm:$0xff] %v1875_v43  ;;  %v1447_v5 = vpop.f32.mrb[15].mxu0 }
 0x1cc   : > { %1536 = vst [vmem:[%s3112_s22 + $0x68] sm:$0xff] %v1447_v5 }
 0x1d6   : > { %v1890_v6 = vpop.f32.mrb[12].mxu1 }
 0x1d7   : > { %1553 = vst [vmem:[%s3112_s22 + $0xf0] sm:$0xff] %v1890_v6  ;;  %v1508_v40 = vpop.f32.mrb[13].mxu1 }
 0x1d8   : > { %1551 = vst [vmem:[%s3112_s22 + $0xe0] sm:$0xff] %v1508_v40  ;;  %v1891_v32 = vpop.f32.mrb[14].mxu1 }
 0x1d9   : > { %1554 = vst [vmem:[%s3112_s22 + $0xf8] sm:$0xff] %v1891_v32  ;;  %v1511_v30 = vpop.f32.mrb[15].mxu1 }
 0x1da   : > { %1552 = vst [vmem:[%s3112_s22 + $0xe8] sm:$0xff] %v1511_v30 }
 0x1db PF: > { %s13_s14 = sadd.s32 1, %s1963_s14   ;;  %s3159_s12 = smov %s1959_s13 }
 0x1dc   : > { %p10_p5 = scmp.ge.s32.totalorder %s13_s14, 4   ;;  %s3160_s13 = smov %s3162_s15 }
 0x1de   :  { %12 = sbr.rel (!%p10_p5) target bundleno = 2 (0x2), region = 70 }

</bundles_post_ra>
